<compile_context>
chip_gen: v5e
topology: v5e:2x2
jax: 0.10.0
libtpu: 0.0.40
codegen_flags: <defaults>
</compile_context>

<pallas_src>
import functools

import jax
import jax.numpy as jnp
import numpy as np
from jax.experimental import pallas as pl
from jax.experimental.pallas import tpu as pltpu


def _mhsa_kernel(x_ref, w_ref, b_ref, gamma_ref, beta_ref, scal_ref, o_ref, *,
                 num_heads, eps):
    Bt, S, D = x_ref.shape
    H = num_heads
    scale = 1.0 / float(D) ** 0.5

    x = x_ref[...]                                    # (Bt, S, D) f32
    cls = x[:, 0, :]                                  # (Bt, D) f32 (residual path kept in f32)

    # Fused Q/K/V projection for all heads in one MXU matmul: M = Bt*S, N = 3*H*D.
    # bf16 operands, f32 accumulation; one fused bias row added once.
    xb = x.reshape(Bt * S, D).astype(w_ref.dtype)
    proj = jnp.dot(xb, w_ref[...], preferred_element_type=jnp.float32) + b_ref[...]
    qkv = proj.reshape(Bt, S, 3 * H * D)              # (Bt, S, 3*H*D) f32

    head_rows = []
    for h in range(H):                                # static unroll over heads
        # CLS query is simply row 0 of the fused projection; fold 1/sqrt(D) into q.
        q = qkv[:, 0:1, h * D:(h + 1) * D] * scale              # (Bt, 1, D)
        k = qkv[:, :, (H + h) * D:(H + h + 1) * D]              # (Bt, S, D)
        v = qkv[:, :, (2 * H + h) * D:(2 * H + h + 1) * D]      # (Bt, S, D)

        s = jnp.einsum('bqd,bkd->bqk', q, k,
                       preferred_element_type=jnp.float32)      # (Bt, 1, S)
        s = s - jnp.max(s, axis=-1, keepdims=True)              # softmax over the seq axis
        p = jnp.exp(s)
        p = p * pl.reciprocal(jnp.sum(p, axis=-1, keepdims=True), approx=True)
        head = jnp.einsum('bqk,bkd->bqd', p, v,
                          preferred_element_type=jnp.float32)   # (Bt, 1, D)
        head_rows.append(head[:, 0, :])                         # (Bt, D)

    # nn.Linear(H, 1) over the head axis == weighted sum of head rows + bias.
    # TODO(synk): the literal torch.cat in the reference would raise for H>1 (2-D vs 3-D
    # tensors after squeeze); we follow the evident intent (same as the JAX reference).
    if H > 1:
        merged = head_rows[0] * scal_ref[0]
        for h in range(1, H):
            merged = merged + head_rows[h] * scal_ref[h]
        merged = merged + scal_ref[H]
    else:
        merged = head_rows[0]

    # mixing_residual: nn.Linear(2, 1) over [merged, cls]  -> (Bt, D)
    res = merged * scal_ref[H + 1] + cls * scal_ref[H + 2] + scal_ref[H + 3]

    # LayerNorm over the embedding dim
    mean = jnp.mean(res, axis=-1, keepdims=True)
    var = jnp.mean((res - mean) ** 2, axis=-1, keepdims=True)
    normed = (res - mean) * jax.lax.rsqrt(var + eps)
    o_ref[...] = (normed * gamma_ref[...] + beta_ref[...]).astype(o_ref.dtype)


def mhsa_pallas(x, params, *, num_heads, eps=1e-5, block_b=None):
    B, S, D = x.shape
    H = num_heads

    # Batch tile: largest tile that keeps the double-buffered x block well inside the
    # v7x-safe 32 MiB scoped-VMEM default, rounded down to a multiple of 8 sublanes.
    if block_b is None:
        budget = 8 * 1024 * 1024                     # bytes allowed for 2x x-block
        bt = max(8, min(512, budget // (2 * S * D * 4)))
        block_b = int(bt) - int(bt) % 8 or 8
    Bt = max(1, min(block_b, B))
    B_pad = -(-B // Bt) * Bt                         # ceil to a multiple of Bt
    if B_pad != B:
        x = jnp.concatenate([x, jnp.zeros((B_pad - B, S, D), x.dtype)], axis=0)

    kernel = functools.partial(_mhsa_kernel, num_heads=H, eps=eps)
    smem = pl.BlockSpec(memory_space=pltpu.MemorySpace.SMEM)

    out = pl.pallas_call(
        kernel,
        out_shape=jax.ShapeDtypeStruct((B_pad, D), jnp.float32),
        grid=(B_pad // Bt,),
        in_specs=[
            pl.BlockSpec((Bt, S, D), lambda b: (b, 0, 0)),       # x
            pl.BlockSpec((D, 3 * H * D), lambda b: (0, 0)),      # fused Q/K/V weights (bf16)
            pl.BlockSpec((1, 3 * H * D), lambda b: (0, 0)),      # fused Q/K/V bias (f32)
            pl.BlockSpec((1, D), lambda b: (0, 0)),              # LN gamma
            pl.BlockSpec((1, D), lambda b: (0, 0)),              # LN beta
            smem,                                                # merge/mixing scalars (1-D)
        ],
        out_specs=pl.BlockSpec((Bt, D), lambda b: (b, 0)),
        compiler_params=pltpu.CompilerParams(dimension_semantics=("parallel",)),
    )(x, params["w_all"], params["b_all"], params["gamma"], params["beta"],
      params["scalars"])
    return out[:B]


def init_params(key, D, H, dropout_sample_num, initializer_range=0.02,
                msd_average=True, matmul_dtype=jnp.bfloat16):
    """Deterministic parameter init mirroring the PyTorch module shapes.

    Dropout_Linear at eval time collapses to one effective linear:
        W_eff = sum_i W_i  (/N if msd_average),  b_eff = sum_i b_i = 0.
    The 3*H effective (D, D) projections are pre-transposed to (in, out) and fused
    column-wise into a single (D, 3*H*D) matrix ordered [Q_0..Q_{H-1}, K_*, V_*]
    (stored in `matmul_dtype` for the MXU); biases are fused into one (1, 3*H*D) row.
    The tiny merge / mixing-residual params are flattened into one 1-D array:
        [W_merge[0..H-1], b_merge, w_mix_merged, w_mix_cls, b_mix].
    """
    keys = jax.random.split(key, 3 * H + 2)

    def eff_linear(k):
        w = jax.random.normal(k, (dropout_sample_num, D, D), jnp.float32) * initializer_range
        w = jnp.sum(w, axis=0)
        if msd_average:
            w = w / dropout_sample_num
        return jnp.transpose(w)                       # (in, out)

    wq = [eff_linear(keys[h]) for h in range(H)]
    wk = [eff_linear(keys[H + h]) for h in range(H)]
    wv = [eff_linear(keys[2 * H + h]) for h in range(H)]
    w_all = jnp.concatenate(wq + wk + wv, axis=1).astype(matmul_dtype)   # (D, 3*H*D)
    b_all = jnp.zeros((1, 3 * H * D), jnp.float32)

    wm = jax.random.normal(keys[3 * H], (H,), jnp.float32) * initializer_range
    wmix = jax.random.normal(keys[3 * H + 1], (2,), jnp.float32) * initializer_range
    scalars = jnp.concatenate([wm, jnp.zeros((1,), jnp.float32),
                               wmix, jnp.zeros((1,), jnp.float32)])      # (H+4,)

    return dict(
        w_all=w_all, b_all=b_all, scalars=scalars,
        gamma=jnp.ones((1, D), jnp.float32), beta=jnp.zeros((1, D), jnp.float32),
    )


def mhsa_ref(x, params, *, num_heads, eps=1e-5):
    """Pure-JAX float32 reference of the (intended) PyTorch forward, for verification."""
    B, S, D = x.shape
    H = num_heads
    cls = x[:, 0, :]
    w_all = params["w_all"].astype(jnp.float32)
    b_all = params["b_all"][0]
    sc = params["scalars"]

    proj = x.reshape(B * S, D) @ w_all + b_all
    qkv = proj.reshape(B, S, 3 * H * D)
    heads = []
    for h in range(H):
        q = qkv[:, 0, h * D:(h + 1) * D]
        K = qkv[:, :, (H + h) * D:(H + h + 1) * D]
        V = qkv[:, :, (2 * H + h) * D:(2 * H + h + 1) * D]
        w = jnp.einsum("bsd,bd->bs", K, q) / (D ** 0.5)
        p = jax.nn.softmax(w, axis=1)[..., None]
        heads.append(jnp.sum(p * V, axis=1))
    if H > 1:
        merged = sum(heads[h] * sc[h] for h in range(H)) + sc[H]
    else:
        merged = heads[0]
    res = merged * sc[H + 1] + cls * sc[H + 2] + sc[H + 3]
    mean = res.mean(-1, keepdims=True)
    var = ((res - mean) ** 2).mean(-1, keepdims=True)
    return (res - mean) / jnp.sqrt(var + eps) * params["gamma"][0] + params["beta"][0]


if __name__ == "__main__":
    B, S, D = 16, 8, 128         # batch, sequence, embedding_dim (D multiple of 128 lanes)
    H = 2                        # cfg.self_attention_head_num
    DROPOUT_SAMPLES = 2          # cfg.dropout_sample_num
    INIT_RANGE = 0.02            # config.initializer_range

    key = jax.random.PRNGKey(0)
    k_x, k_p = jax.random.split(key)
    x = jax.random.normal(k_x, (B, S, D), jnp.float32)
    params = init_params(k_p, D, H, DROPOUT_SAMPLES, INIT_RANGE, msd_average=True)

    out = mhsa_pallas(x, params, num_heads=H, block_b=8)   # 2 "parallel" grid steps
    out = jax.block_until_ready(out)

    ref = mhsa_ref(x, params, num_heads=H)
    # bf16 MXU operands + approx softmax reciprocal => slightly looser than pure-f32 check.
    np.testing.assert_allclose(np.asarray(out), np.asarray(ref), atol=5e-3, rtol=5e-3)

    print("KERNEL_OK")
</pallas_src>

<mosaic_0001>
module attributes {stable_mosaic.version = 11 : i64} {
  func.func @_mhsa_kernel(%arg0: i32, %arg1: memref<8x8x128xf32, #tpu.memory_space<vmem>>, %arg2: memref<128x768xbf16, #tpu.memory_space<vmem>>, %arg3: memref<1x768xf32, #tpu.memory_space<vmem>>, %arg4: memref<1x128xf32, #tpu.memory_space<vmem>>, %arg5: memref<1x128xf32, #tpu.memory_space<vmem>>, %arg6: memref<6xf32, #tpu.memory_space<smem>>, %arg7: memref<8x128xf32, #tpu.memory_space<vmem>>) attributes {dimension_semantics = [#tpu.dimension_semantics<parallel>], iteration_bounds = array<i64: 2>, scalar_prefetch = 0 : i64, scratch_operands = 0 : i64, tpu.core_type = #tpu.core_type<tc>, window_params = [{transform_indices = @transform_0, window_bounds = array<i64: 8, 8, 128>}, {pipeline_mode = #tpu.pipeline_mode<synchronous>, transform_indices = @transform_1, window_bounds = array<i64: 128, 768>}, {pipeline_mode = #tpu.pipeline_mode<synchronous>, transform_indices = @transform_2, window_bounds = array<i64: 1, 768>}, {pipeline_mode = #tpu.pipeline_mode<synchronous>, transform_indices = @transform_3, window_bounds = array<i64: 1, 128>}, {pipeline_mode = #tpu.pipeline_mode<synchronous>, transform_indices = @transform_4, window_bounds = array<i64: 1, 128>}, {transform_indices = @transform_5, window_bounds = array<i64: 6>}, {transform_indices = @transform_6, window_bounds = array<i64: 8, 128>}]} {
    %c0 = arith.constant 0 : index
    %c0_0 = arith.constant 0 : index
    %c0_1 = arith.constant 0 : index
    %0 = vector.load %arg1[%c0, %c0_0, %c0_1] : memref<8x8x128xf32, #tpu.memory_space<vmem>>, vector<8x8x128xf32>
    %1 = vector.extract_strided_slice %0 {offsets = [0, 0, 0], sizes = [8, 1, 128], strides = [1, 1, 1]} : vector<8x8x128xf32> to vector<8x1x128xf32>
    %2 = vector.shape_cast %1 : vector<8x1x128xf32> to vector<8x128xf32>
    %3 = vector.shape_cast %0 : vector<8x8x128xf32> to vector<64x128xf32>
    %4 = arith.truncf %3 : vector<64x128xf32> to vector<64x128xbf16>
    %c0_2 = arith.constant 0 : index
    %c0_3 = arith.constant 0 : index
    %5 = vector.load %arg2[%c0_2, %c0_3] : memref<128x768xbf16, #tpu.memory_space<vmem>>, vector<128x768xbf16>
    %cst = arith.constant dense<0.000000e+00> : vector<64x768xf32>
    %6 = tpu.matmul %4, %5, %cst {dimension_numbers = #tpu.dot_dimension_numbers<[1], [0], [0], [1], [0, 0, 1, 1], [], []>} : vector<64x128xbf16>, vector<128x768xbf16>, vector<64x768xf32> -> vector<64x768xf32>
    %c0_4 = arith.constant 0 : index
    %c0_5 = arith.constant 0 : index
    %7 = vector.load %arg3[%c0_4, %c0_5] : memref<1x768xf32, #tpu.memory_space<vmem>>, vector<1x768xf32>
    %8 = vector.broadcast %7 : vector<1x768xf32> to vector<64x768xf32>
    %9 = arith.addf %6, %8 : vector<64x768xf32>
    %10 = vector.shape_cast %9 : vector<64x768xf32> to vector<8x8x768xf32>
    %11 = vector.extract_strided_slice %10 {offsets = [0, 0, 0], sizes = [8, 1, 128], strides = [1, 1, 1]} : vector<8x8x768xf32> to vector<8x1x128xf32>
    %cst_6 = arith.constant 0.0883883461 : f32
    %12 = vector.broadcast %cst_6 : f32 to vector<8x1x128xf32>
    %13 = arith.mulf %11, %12 : vector<8x1x128xf32>
    %14 = vector.extract_strided_slice %10 {offsets = [0, 0, 256], sizes = [8, 8, 128], strides = [1, 1, 1]} : vector<8x8x768xf32> to vector<8x8x128xf32>
    %15 = vector.extract_strided_slice %10 {offsets = [0, 0, 512], sizes = [8, 8, 128], strides = [1, 1, 1]} : vector<8x8x768xf32> to vector<8x8x128xf32>
    "tpu.trace_start"() <{level = 10 : i32, message = "bqd,bkd->bqk"}> : () -> ()
    %cst_7 = arith.constant dense<0.000000e+00> : vector<8x1x8xf32>
    %16 = tpu.matmul %13, %14, %cst_7 {dimension_numbers = #tpu.dot_dimension_numbers<[2], [2], [1], [1], [0, 0, 0, 1, 1, 1], [0], [0]>} : vector<8x1x128xf32>, vector<8x8x128xf32>, vector<8x1x8xf32> -> vector<8x1x8xf32>
    "tpu.trace_stop"() : () -> ()
    %cst_8 = arith.constant dense<0xFF800000> : vector<8x1xf32>
    %17 = vector.multi_reduction <maximumf>, %16, %cst_8 [2] : vector<8x1x8xf32> to vector<8x1xf32>
    %18 = vector.shape_cast %17 : vector<8x1xf32> to vector<8x1x1xf32>
    %19 = vector.broadcast %18 : vector<8x1x1xf32> to vector<8x1x8xf32>
    %20 = arith.subf %16, %19 : vector<8x1x8xf32>
    %21 = math.exp %20 : vector<8x1x8xf32>
    %cst_9 = arith.constant dense<0.000000e+00> : vector<8x1xf32>
    %22 = vector.multi_reduction <add>, %21, %cst_9 [2] : vector<8x1x8xf32> to vector<8x1xf32>
    %23 = vector.shape_cast %22 : vector<8x1xf32> to vector<8x1x1xf32>
    %24 = tpu.reciprocal %23 {approx = true} : vector<8x1x1xf32> -> vector<8x1x1xf32>
    %25 = vector.broadcast %24 : vector<8x1x1xf32> to vector<8x1x8xf32>
    %26 = arith.mulf %21, %25 : vector<8x1x8xf32>
    "tpu.trace_start"() <{level = 10 : i32, message = "bqk,bkd->bqd"}> : () -> ()
    %cst_10 = arith.constant dense<0.000000e+00> : vector<8x1x128xf32>
    %27 = tpu.matmul %26, %15, %cst_10 {dimension_numbers = #tpu.dot_dimension_numbers<[2], [1], [1], [2], [0, 0, 0, 1, 1, 2], [0], [0]>} : vector<8x1x8xf32>, vector<8x8x128xf32>, vector<8x1x128xf32> -> vector<8x1x128xf32>
    "tpu.trace_stop"() : () -> ()
    %28 = vector.shape_cast %27 : vector<8x1x128xf32> to vector<8x128xf32>
    %29 = vector.extract_strided_slice %10 {offsets = [0, 0, 128], sizes = [8, 1, 128], strides = [1, 1, 1]} : vector<8x8x768xf32> to vector<8x1x128xf32>
    %cst_11 = arith.constant 0.0883883461 : f32
    %30 = vector.broadcast %cst_11 : f32 to vector<8x1x128xf32>
    %31 = arith.mulf %29, %30 : vector<8x1x128xf32>
    %32 = vector.extract_strided_slice %10 {offsets = [0, 0, 384], sizes = [8, 8, 128], strides = [1, 1, 1]} : vector<8x8x768xf32> to vector<8x8x128xf32>
    %33 = vector.extract_strided_slice %10 {offsets = [0, 0, 640], sizes = [8, 8, 128], strides = [1, 1, 1]} : vector<8x8x768xf32> to vector<8x8x128xf32>
    "tpu.trace_start"() <{level = 10 : i32, message = "bqd,bkd->bqk"}> : () -> ()
    %cst_12 = arith.constant dense<0.000000e+00> : vector<8x1x8xf32>
    %34 = tpu.matmul %31, %32, %cst_12 {dimension_numbers = #tpu.dot_dimension_numbers<[2], [2], [1], [1], [0, 0, 0, 1, 1, 1], [0], [0]>} : vector<8x1x128xf32>, vector<8x8x128xf32>, vector<8x1x8xf32> -> vector<8x1x8xf32>
    "tpu.trace_stop"() : () -> ()
    %cst_13 = arith.constant dense<0xFF800000> : vector<8x1xf32>
    %35 = vector.multi_reduction <maximumf>, %34, %cst_13 [2] : vector<8x1x8xf32> to vector<8x1xf32>
    %36 = vector.shape_cast %35 : vector<8x1xf32> to vector<8x1x1xf32>
    %37 = vector.broadcast %36 : vector<8x1x1xf32> to vector<8x1x8xf32>
    %38 = arith.subf %34, %37 : vector<8x1x8xf32>
    %39 = math.exp %38 : vector<8x1x8xf32>
    %cst_14 = arith.constant dense<0.000000e+00> : vector<8x1xf32>
    %40 = vector.multi_reduction <add>, %39, %cst_14 [2] : vector<8x1x8xf32> to vector<8x1xf32>
    %41 = vector.shape_cast %40 : vector<8x1xf32> to vector<8x1x1xf32>
    %42 = tpu.reciprocal %41 {approx = true} : vector<8x1x1xf32> -> vector<8x1x1xf32>
    %43 = vector.broadcast %42 : vector<8x1x1xf32> to vector<8x1x8xf32>
    %44 = arith.mulf %39, %43 : vector<8x1x8xf32>
    "tpu.trace_start"() <{level = 10 : i32, message = "bqk,bkd->bqd"}> : () -> ()
    %cst_15 = arith.constant dense<0.000000e+00> : vector<8x1x128xf32>
    %45 = tpu.matmul %44, %33, %cst_15 {dimension_numbers = #tpu.dot_dimension_numbers<[2], [1], [1], [2], [0, 0, 0, 1, 1, 2], [0], [0]>} : vector<8x1x8xf32>, vector<8x8x128xf32>, vector<8x1x128xf32> -> vector<8x1x128xf32>
    "tpu.trace_stop"() : () -> ()
    %46 = vector.shape_cast %45 : vector<8x1x128xf32> to vector<8x128xf32>
    %c0_16 = arith.constant 0 : index
    %47 = memref.load %arg6[%c0_16] : memref<6xf32, #tpu.memory_space<smem>>
    %48 = vector.broadcast %47 : f32 to vector<8x128xf32>
    %49 = arith.mulf %28, %48 : vector<8x128xf32>
    %c1 = arith.constant 1 : index
    %50 = memref.load %arg6[%c1] : memref<6xf32, #tpu.memory_space<smem>>
    %51 = vector.broadcast %50 : f32 to vector<8x128xf32>
    %52 = arith.mulf %46, %51 : vector<8x128xf32>
    %53 = arith.addf %49, %52 : vector<8x128xf32>
    %c2 = arith.constant 2 : index
    %54 = memref.load %arg6[%c2] : memref<6xf32, #tpu.memory_space<smem>>
    %55 = vector.broadcast %54 : f32 to vector<8x128xf32>
    %56 = arith.addf %53, %55 : vector<8x128xf32>
    %c3 = arith.constant 3 : index
    %57 = memref.load %arg6[%c3] : memref<6xf32, #tpu.memory_space<smem>>
    %58 = vector.broadcast %57 : f32 to vector<8x128xf32>
    %59 = arith.mulf %56, %58 : vector<8x128xf32>
    %c4 = arith.constant 4 : index
    %60 = memref.load %arg6[%c4] : memref<6xf32, #tpu.memory_space<smem>>
    %61 = vector.broadcast %60 : f32 to vector<8x128xf32>
    %62 = arith.mulf %2, %61 : vector<8x128xf32>
    %63 = arith.addf %59, %62 : vector<8x128xf32>
    %c5 = arith.constant 5 : index
    %64 = memref.load %arg6[%c5] : memref<6xf32, #tpu.memory_space<smem>>
    %65 = vector.broadcast %64 : f32 to vector<8x128xf32>
    %66 = arith.addf %63, %65 : vector<8x128xf32>
    %cst_17 = arith.constant dense<0.000000e+00> : vector<8xf32>
    %67 = vector.multi_reduction <add>, %66, %cst_17 [1] : vector<8x128xf32> to vector<8xf32>
    %68 = vector.shape_cast %67 : vector<8xf32> to vector<8x1xf32>
    %cst_18 = arith.constant 1.280000e+02 : f32
    %69 = vector.broadcast %cst_18 : f32 to vector<8x1xf32>
    %70 = arith.divf %68, %69 : vector<8x1xf32>
    %71 = vector.broadcast %70 : vector<8x1xf32> to vector<8x128xf32>
    %72 = arith.subf %66, %71 : vector<8x128xf32>
    %73 = arith.mulf %72, %72 : vector<8x128xf32>
    %cst_19 = arith.constant dense<0.000000e+00> : vector<8xf32>
    %74 = vector.multi_reduction <add>, %73, %cst_19 [1] : vector<8x128xf32> to vector<8xf32>
    %75 = vector.shape_cast %74 : vector<8xf32> to vector<8x1xf32>
    %cst_20 = arith.constant 1.280000e+02 : f32
    %76 = vector.broadcast %cst_20 : f32 to vector<8x1xf32>
    %77 = arith.divf %75, %76 : vector<8x1xf32>
    %78 = vector.broadcast %70 : vector<8x1xf32> to vector<8x128xf32>
    %79 = arith.subf %66, %78 : vector<8x128xf32>
    %cst_21 = arith.constant 9.99999974E-6 : f32
    %80 = vector.broadcast %cst_21 : f32 to vector<8x1xf32>
    %81 = arith.addf %77, %80 : vector<8x1xf32>
    %82 = math.rsqrt %81 : vector<8x1xf32>
    %83 = vector.broadcast %82 : vector<8x1xf32> to vector<8x128xf32>
    %84 = arith.mulf %79, %83 : vector<8x128xf32>
    %c0_22 = arith.constant 0 : index
    %c0_23 = arith.constant 0 : index
    %85 = vector.load %arg4[%c0_22, %c0_23] : memref<1x128xf32, #tpu.memory_space<vmem>>, vector<1x128xf32>
    %86 = vector.broadcast %85 : vector<1x128xf32> to vector<8x128xf32>
    %87 = arith.mulf %84, %86 : vector<8x128xf32>
    %c0_24 = arith.constant 0 : index
    %c0_25 = arith.constant 0 : index
    %88 = vector.load %arg5[%c0_24, %c0_25] : memref<1x128xf32, #tpu.memory_space<vmem>>, vector<1x128xf32>
    %89 = vector.broadcast %88 : vector<1x128xf32> to vector<8x128xf32>
    %90 = arith.addf %87, %89 : vector<8x128xf32>
    %c0_26 = arith.constant 0 : index
    %c0_27 = arith.constant 0 : index
    %91 = vector.load %arg7[%c0_26, %c0_27] : memref<8x128xf32, #tpu.memory_space<vmem>>, vector<8x128xf32>
    tpu.vector_store %arg7[%c0_26, %c0_27], %90 {strides = array<i32>} : memref<8x128xf32, #tpu.memory_space<vmem>>, vector<8x128xf32>,
    return
  }
  func.func @transform_0(%arg0: i32) -> (i32, i32, i32) {
    %c0_i32 = arith.constant 0 : i32
    %c0_i32_0 = arith.constant 0 : i32
    %c0_i32_1 = arith.constant 0 : i32
    return %arg0, %c0_i32, %c0_i32_0 : i32, i32, i32
  }
  func.func @transform_1(%arg0: i32) -> (i32, i32) {
    %c0_i32 = arith.constant 0 : i32
    %c0_i32_0 = arith.constant 0 : i32
    %c0_i32_1 = arith.constant 0 : i32
    return %c0_i32, %c0_i32_0 : i32, i32
  }
  func.func @transform_2(%arg0: i32) -> (i32, i32) {
    %c0_i32 = arith.constant 0 : i32
    %c0_i32_0 = arith.constant 0 : i32
    %c0_i32_1 = arith.constant 0 : i32
    return %c0_i32, %c0_i32_0 : i32, i32
  }
  func.func @transform_3(%arg0: i32) -> (i32, i32) {
    %c0_i32 = arith.constant 0 : i32
    %c0_i32_0 = arith.constant 0 : i32
    %c0_i32_1 = arith.constant 0 : i32
    return %c0_i32, %c0_i32_0 : i32, i32
  }
  func.func @transform_4(%arg0: i32) -> (i32, i32) {
    %c0_i32 = arith.constant 0 : i32
    %c0_i32_0 = arith.constant 0 : i32
    %c0_i32_1 = arith.constant 0 : i32
    return %c0_i32, %c0_i32_0 : i32, i32
  }
  func.func @transform_5(%arg0: i32) -> i32 {
    %c0_i32 = arith.constant 0 : i32
    %c0_i32_0 = arith.constant 0 : i32
    return %c0_i32 : i32
  }
  func.func @transform_6(%arg0: i32) -> (i32, i32) {
    %c0_i32 = arith.constant 0 : i32
    %c0_i32_0 = arith.constant 0 : i32
    return %arg0, %c0_i32 : i32, i32
  }
}

</mosaic_0001>

<bundles_post_ra>
// kernel: tpu_custom_call.1
= control target key start
LH: loop header
LB: loop body
LE: loop exit
PB: predicated region body
PF: predicated region fallthrough
CT: control target
= control target key end

     0   :  { %11 = vsyncpa [#allocation3], 0  ;;  %s3171_s0 = inlined_call_operand.hbm [shape: f32[16,8,128], index: 0, kind: input, shape index: {}]   ;;  %s3172_s1 = inlined_call_operand.hbm [shape: bf16[128,768], index: 1, kind: input, shape index: {}]   ;;  %s3173_s2 = inlined_call_operand.hbm [shape: f32[1,768], index: 2, kind: input, shape index: {}]   ;;  %s3174_s3 = inlined_call_operand.vmem [shape: f32[1,128], index: 3, kind: input, shape index: {}]   ;;  %s3175_s4 = inlined_call_operand.vmem [shape: f32[1,128], index: 4, kind: input, shape index: {}]   ;;  %s3176_s5 = inlined_call_operand.vmem [shape: f32[6], index: 5, kind: input, shape index: {}]   ;;  %s3177_s6 = inlined_call_operand.hbm [shape: f32[16,128], index: 6, kind: output, shape index: {}]  }
   0x1   :  { %13 = vsyncpa [#allocation3 + $0x1], 0 }
   0x2   :  { %14 = vsyncpa [#allocation7], 0 }
   0x3   :  { %15 = vsyncpa [#allocation5], 0 }
   0x4   :  { %16 = vsyncpa [#allocation4], 0 }
   0x5   :  { %18 = vsyncpa [#allocation4 + $0x1], 0  ;;  %s2727_s21 = smov 0   ;;  %s2729_s22 = smov 0  }
   0x6   :  { %s2731_s23 = smov 0   ;;  %s2733_s24 = smov 0  }
   0x7 LB: > { %s2748_s25 = sadd.s32 4294967295, %s2682_s24   ;;  %s2062_s26 = sadd.s32 4294967294, %s2682_s24   ;;  %s2682_s24 = sphi %s2733_s24, %s3188_s24   ;;  %s2678_s23 = sphi %s2731_s23, %s3187_s23   ;;  %s2674_s22 = sphi %s2729_s22, %s3186_s22   ;;  %s2670_s21 = sphi %s2727_s21, %s3185_s21  }
   0x8   : > { %p44_p0 = scmp.ne.s32.totalorder %s2674_s22, %s2670_s21  ;;  %p45_p1 = scmp.eq.s32.totalorder %s2748_s25, 0 }
   0x9   : > { %p173_p2 = scmp.eq.s32.totalorder %s2748_s25, 1  ;;  %p179_p3 = scmp.eq.s32.totalorder %s2062_s26, 1 }
   0xa   : > { %p2757_p4 = por %p45_p1, %p44_p0  ;;  %p2063_p5 = scmp.ge.s32.totalorder %s2682_s24, 1 }
   0xb   : > { %p2762_p6 = por %p179_p3, %p44_p0  ;;  %p186_p7 = scmp.lt.s32.totalorder %s2682_s24, 3 }
   0xc   : > { %s197_s7 = sshll.u32 %s3172_s1, 4  ;;  %s2684_s9 = smov [#allocation6]   ;;  %s198_s7 = int_to_ptr.hbm [resolvable:$true] %s197_s7 }
   0xd   : > { %p2770_p8 = pnand %p2063_p5, %p186_p7  ;;  %s199_s10 = sshll.u32 %s2684_s9, 4  ;;  %s200_s10 = int_to_ptr.vmem [resolvable:$true] %s199_s10 }
   0xe   : > { %s212_s14 = sshll.u32 %s3173_s2, 4  ;;  %s2685_s15 = smov 384   ;;  %s213_s14 = int_to_ptr.hbm [resolvable:$true] %s212_s14 }
   0xf   : > { %p2359_p9 = pneg %p2770_p8  ;;  %s2686_s16 = smov 24  }
  0x10   : > { %s2687_s17 = smov [#allocation8]   ;;  %s230_s26 = sshll.u32 %s3176_s5, 4  ;;  %s231_s26 = int_to_ptr.vmem [resolvable:$true] %s230_s26 }
  0x11   : > { %p2778_p10 = pnand %p2359_p9, %p45_p1  ;;  %s214_s18 = sshll.u32 %s2687_s17, 4  ;;  %s215_s18 = int_to_ptr.vmem [resolvable:$true] %s214_s18 }
  0x12   : > { %s2688_s29 = smov [#allocation9]   ;;  %s2796_s30 = sadd.s32 1, %s2682_s24  }
  0x13   : > { %2362 = dma.hbm_to_vmem [thread:$0]  (!%p2778_p10), %s198_s7, 6144, %s200_s10, [#allocation7], %s2685_s15, %s2685_s15, %s2686_s16  }
  0x14   : > { %2365 = dma.hbm_to_vmem [thread:$0]  (!%p2778_p10), %s213_s14, 96, %s215_s18, [#allocation7]  }
  0x15   : > { %2368 = dma.vmem_to_smem (!%p2778_p10), %s231_s26, 16, %s2688_s29, [#allocation5]  }
  0x16   : > { %s28_s7 = ssub.s32 %s2682_s24, %s2796_s30  ;;  %s31_s9 = sadd.s32 1, %s2678_s23 }
  0x17   : > { %p29_p12 = scmp.eq.s32.totalorder %s28_s7, 0  ;;  %p38_p13 = scmp.ne.s32.totalorder %s2678_s23, %s2674_s22 }
  0x18   : > { %p39_p0 = scmp.eq.s32.totalorder %s2682_s24, 0  ;;  %p2380_p3 = scmp.lt.s32.totalorder %s2682_s24, 2 }
  0x19   : > { %s2806_s10 = scalar_select %p29_p12, %s2678_s23, %s31_s9  }
  0x1a   : > { %p40_p5 = por %p39_p0, %p38_p13  ;;  %p2810_p7 = por %p173_p2, %p38_p13 }
  0x1b   : > { %s241_s11 = sand.u32 1, %s2678_s23   ;;  %s2294_s13 = sshll.u32 %s2682_s24, 6 }
  0x1c   : > { %s2068_s14 = sshll.u32 %s241_s11, 6  ;;  %s250_s17 = scalar_lea.hbm %s3171_s0, %s2294_s13 }
  0x1d   : > { %s251_s18 = sshll.u32 %s250_s17, 4  ;;  %s245_s19 = scalar_lea.vmem [#allocation2], %s2068_s14  ;;  %s252_s18 = int_to_ptr.hbm [resolvable:$true] %s251_s18 }
  0x1e   : > { %s253_s20 = sshll.u32 %s245_s19, 4  ;;  %p2821_p9 = pnand %p2380_p3, %p40_p5  ;;  %s254_s20 = int_to_ptr.vmem [resolvable:$true] %s253_s20 }
  0x1f   : > { %s242_s29 = scalar_lea.sflag [#allocation3], %s241_s11  ;;  %s2578_s7 = sshra.s32 %s252_s18, 4  ;;  %s2579_s7 = int_to_ptr.hbm [resolvable:$true] %s2578_s7 }
  0x20   : > { %s2580_s9 = scalar_lea.hbm %s2579_s7, 64  ;;  %p2582_p10 = pneg %p2821_p9 }
  0x21   : > { %p2581_p2 = scmp.ne.s32.totalorder %s2579_s7, %s2580_s9  ;;  %s2585_s15 = scalar_lea.hbm %s3171_s0, 128 }
  0x22   : > { %p2586_p0 = scmp.lt.s32.totalorder %s2579_s7, %s3171_s0  ;;  %p2587_p3 = scmp.lt.s32.totalorder %s2585_s15, %s2580_s9 }
  0x23   : > { %p2583_p12 = pnand %p2582_p10, %p2581_p2 }
  0x24   : > { %p2588_p5 = por %p2587_p3, %p2586_p0 }
  0x25   : > { %p2584_p13 = pneg %p2583_p12 }
  0x27   : > { %p2589_p11 = pnand %p2588_p5, %p2584_p13 }
  0x29   : > { %2592 = shalt.err (!%p2589_p11)
}
  0x2a   : > { %s2689_s11 = smov 128   ;;  %s2690_s19 = smov 8  }
  0x2b   : > { %2372 = dma.hbm_to_vmem [thread:$0]  (!%p2821_p9), %s252_s18, 1024, %s254_s20, %s242_s29, %s2689_s11, %s2689_s11, %s2690_s19  }
  0x2c   : > { %265 = sbr.rel (%p2770_p8) target bundleno = 1514 (0x5ea), region = 44  ;;  %s2838_s13 = sand.u32 (!%p2770_p8), 1, %s2674_s22  }
  0x2d   : > { %s2072_s14 = sshll.u32 (!%p2770_p8), %s2838_s13, 6  ;;  %s268_s7 = scalar_lea.sflag (!%p2770_p8), [#allocation3], %s2838_s13 }
  0x2e   : > { %s2842_s9 = scalar_lea.vmem (!%p2770_p8), [#allocation2], %s2072_s14 }
  0x31   : > { %2653 = dma.done.wait (%p2757_p4), %s268_s7, 1024  }
  0x32   : > { %2655 = vsyncadd (%p2757_p4), %s268_s7, 4294966272 }
  0x33   : > { %2657 = dma.done.wait (%p45_p1), [#allocation7], 6240  }
  0x34   : > { %2659 = vsyncadd (%p45_p1), [#allocation7], 4294961056 }
  0x35   : > { %2661 = dma.done.wait (%p45_p1), [#allocation5], 16  }
  0x36   : > { %2663 = vsyncadd (%p45_p1), [#allocation5], 4294967280 }
  0x37   : > { %292 = sfence }
  0x38   : > { %v2255_v0 = vld [vmem:[#allocation6 + $0x158] sm:$0xf]  ;;  %v2341_v1 = vld [vmem:[#allocation6 + $0x16c] sm:$0xf0]  ;;  %v2231_v2 = vld [vmem:[#allocation6 + $0x128] sm:$0xf] }
  0x39   : > { %v2256_v3 = vor.u32 %v2341_v1, %v2255_v0  ;;  %v2335_v4 = vld [vmem:[#allocation6 + $0x13c] sm:$0xf0]  ;;  %v2247_v5 = vld [vmem:[#allocation6 + $0x150] sm:$0xf]  ;;  %v2340_v6 = vld [vmem:[#allocation6 + $0x164] sm:$0xf0] }
  0x3a   : > { %v2248_v7 = vor.u32 %v2340_v6, %v2247_v5  ;;  %v2223_v8 = vld [vmem:[#allocation6 + $0x120] sm:$0xf]  ;;  %v2232_v9 = vor.u32 %v2335_v4, %v2231_v2  ;;  %v2334_v10 = vld [vmem:[#allocation6 + $0x134] sm:$0xf0]  ;;  %v2329_v12 = vld [vmem:[#allocation6 + $0x10c] sm:$0xf0] }
  0x3b   : > { %690 = vmatpush.bf16.msra.mxu2 %v2256_v3  ;;  %v2207_v11 = vld [vmem:[#allocation6 + $0xf8] sm:$0xf]  ;;  %v2224_v13 = vor.u32 %v2334_v10, %v2223_v8  ;;  %v2199_v14 = vld [vmem:[#allocation6 + $0xf0] sm:$0xf]  ;;  %v2328_v15 = vld [vmem:[#allocation6 + $0x104] sm:$0xf0] }
  0x3c   : > { %632 = vmatpush.bf16.msra.mxu0 %v2248_v7  ;;  %v2208_v16 = vor.u32 %v2329_v12, %v2207_v11  ;;  %v2183_v17 = vld [vmem:[#allocation6 + $0xc8] sm:$0xf]  ;;  %v2323_v18 = vld [vmem:[#allocation6 + $0xdc] sm:$0xf0]  ;;  %v2200_v19 = vor.u32 %v2328_v15, %v2199_v14  ;;  %v2322_v21 = vld [vmem:[#allocation6 + $0xd4] sm:$0xf0] }
  0x3d   : > { %v2175_v20 = vld [vmem:[#allocation6 + $0xc0] sm:$0xf]  ;;  %v2184_v22 = vor.u32 %v2323_v18, %v2183_v17  ;;  %v2159_v23 = vld [vmem:[#allocation6 + $0x98] sm:$0xf]  ;;  %v2317_v24 = vld [vmem:[#allocation6 + $0xac] sm:$0xf0] }
  0x3e   : > { %v2176_v25 = vor.u32 %v2322_v21, %v2175_v20  ;;  %v2151_v26 = vld [vmem:[#allocation6 + $0x90] sm:$0xf]  ;;  %v2316_v27 = vld [vmem:[#allocation6 + $0xa4] sm:$0xf0]  ;;  %v2160_v28 = vor.u32 %v2317_v24, %v2159_v23  ;;  %v2311_v30 = vld [vmem:[#allocation6 + $0x7c] sm:$0xf0] }
  0x3f   : > { %691 = vmatpush.bf16.msra.mxu2 %v2232_v9  ;;  %v2135_v29 = vld [vmem:[#allocation6 + $0x68] sm:$0xf]  ;;  %v2152_v31 = vor.u32 %v2316_v27, %v2151_v26  ;;  %v2127_v32 = vld [vmem:[#allocation6 + $0x60] sm:$0xf]  ;;  %v2310_v33 = vld [vmem:[#allocation6 + $0x74] sm:$0xf0] }
  0x40   : > { %633 = vmatpush.bf16.msra.mxu0 %v2224_v13  ;;  %v2136_v34 = vor.u32 %v2311_v30, %v2135_v29  ;;  %v2111_v35 = vld [vmem:[#allocation6 + $0x38] sm:$0xf]  ;;  %v2305_v36 = vld [vmem:[#allocation6 + $0x4c] sm:$0xf0]  ;;  %v2128_v37 = vor.u32 %v2310_v33, %v2127_v32  ;;  %v2304_v39 = vld [vmem:[#allocation6 + $0x44] sm:$0xf0] }
  0x41   : > { %v2103_v38 = vld [vmem:[#allocation6 + $0x30] sm:$0xf]  ;;  %v2112_v40 = vor.u32 %v2305_v36, %v2111_v35  ;;  %v2087_v41 = vld [vmem:[#allocation6 + $0x8] sm:$0xf]  ;;  %v2299_v42 = vld [vmem:[#allocation6 + $0x1c] sm:$0xf0] }
  0x42   : > { %v2104_v43 = vor.u32 %v2304_v39, %v2103_v38  ;;  %v2079_v44 = vld [vmem:[#allocation6] sm:$0xf]  ;;  %v2298_v45 = vld [vmem:[#allocation6 + $0x14] sm:$0xf0]  ;;  %v2088_v46 = vor.u32 %v2299_v42, %v2087_v41  ;;  %v319_v48 = vld [vmem:[%s2842_s9 + $0x8] sm:$0xff]  ;;  %vm974_vm0 = vcmask 57344  }
  0x43   : > { %692 = vmatpush.bf16.msra.mxu2 %v2208_v16  ;;  %v318_v47 = vld [vmem:[%s2842_s9] sm:$0xff]  ;;  %v2080_v49 = vor.u32 %v2298_v45, %v2079_v44  ;;  %v320_v51 = vld [vmem:[%s2842_s9 + $0x10] sm:$0xff]  ;;  %v321_v52 = vld [vmem:[%s2842_s9 + $0x18] sm:$0xff]  ;;  %vm1063_vm1 = vcmask 64512   ;;  %s2285_s27 = sld [smem:[#allocation9 + $0x1]]  ;;  %vm1773_vm2 = vcmask 1041409  }
  0x44   : > { %634 = vmatpush.bf16.msra.mxu0 %v2200_v19  ;;  %v2858_v50 = vpack.c.bf16 %v319_v48, %v318_v47  ;;  %v2864_v53 = vpack.c.bf16 %v321_v52, %v320_v51  ;;  %v2338_v54 = vld [vmem:[#allocation6 + $0x15c] sm:$0xf]  ;;  %v2257_v55 = vld [vmem:[#allocation6 + $0x170] sm:$0xf0]  ;;  %v2332_v56 = vld [vmem:[#allocation6 + $0x12c] sm:$0xf] }
  0x45   : > { %v2260_v57 = vor.u32 %v2338_v54, %v2257_v55  ;;  %v2233_v58 = vld [vmem:[#allocation6 + $0x140] sm:$0xf0]  ;;  %v2326_v60 = vld [vmem:[#allocation6 + $0xfc] sm:$0xf]  ;;  %v2209_v61 = vld [vmem:[#allocation6 + $0x110] sm:$0xf0] }
  0x46   : > { %v2236_v59 = vor.u32 %v2332_v56, %v2233_v58  ;;  %v2212_v62 = vor.u32 %v2326_v60, %v2209_v61  ;;  %v2320_v63 = vld [vmem:[#allocation6 + $0xcc] sm:$0xf]  ;;  %v2185_v0 = vld [vmem:[#allocation6 + $0xe0] sm:$0xf0]  ;;  %v2314_v5 = vld [vmem:[#allocation6 + $0x9c] sm:$0xf] }
  0x47   : > { %693 = vmatpush.bf16.msra.mxu2 %v2184_v22  ;;  %719 = vmatpush.bf16.msra.mxu3 %v2260_v57  ;;  %v322_v1 = vld [vmem:[%s2842_s9 + $0x20] sm:$0xff]  ;;  %v323_v2 = vld [vmem:[%s2842_s9 + $0x28] sm:$0xff]  ;;  %v2188_v3 = vor.u32 %v2320_v63, %v2185_v0  ;;  %v2161_v6 = vld [vmem:[#allocation6 + $0xb0] sm:$0xf0]  ;;  %s1688_s8 = sld [smem:[#allocation9]]  ;;  %vm1776_vm3 = vcmask 1042434  }
  0x48   : > { %635 = vmatpush.bf16.msra.mxu0 %v2176_v25  ;;  %v2870_v4 = vpack.c.bf16 %v323_v2, %v322_v1  ;;  %v2164_v7 = vor.u32 %v2314_v5, %v2161_v6  ;;  %v2308_v8 = vld [vmem:[#allocation6 + $0x6c] sm:$0xf]  ;;  %v2137_v9 = vld [vmem:[#allocation6 + $0x80] sm:$0xf0]  ;;  %v2302_v11 = vld [vmem:[#allocation6 + $0x3c] sm:$0xf] }
  0x49   : > { %v2140_v10 = vor.u32 %v2308_v8, %v2137_v9  ;;  %v2113_v12 = vld [vmem:[#allocation6 + $0x50] sm:$0xf0]  ;;  %v2296_v14 = vld [vmem:[#allocation6 + $0xc] sm:$0xf]  ;;  %v2089_v15 = vld [vmem:[#allocation6 + $0x20] sm:$0xf0] }
  0x4a   : > { %v2116_v13 = vor.u32 %v2302_v11, %v2113_v12  ;;  %v324_v16 = vld [vmem:[%s2842_s9 + $0x30] sm:$0xff]  ;;  %v325_v17 = vld [vmem:[%s2842_s9 + $0x38] sm:$0xff]  ;;  %v2092_v18 = vor.u32 %v2296_v14, %v2089_v15  ;;  %v2884_v20 = vld [vmem:[#allocation8] sm:$0x3f]  ;;  %s2286_s18 = sld [smem:[#allocation9 + $0x2]]  ;;  %vm1779_vm4 = vcmask 1043459  }
  0x4b   : > { %694 = vmatpush.bf16.msra.mxu2 %v2160_v28  ;;  %720 = vmatpush.bf16.msra.mxu3 %v2236_v59  ;;  %v2876_v19 = vpack.c.bf16 %v325_v17, %v324_v16  ;;  %v2887_v21 = vperm.slane %v2884_v20, 0  ;;  %v2890_v23 = vperm.slane %v2884_v20, 2  ;;  %v2337_v33 = vld [vmem:[#allocation6 + $0x154] sm:$0xf]  ;;  %v2331_v38 = vld [vmem:[#allocation6 + $0x124] sm:$0xf] }
  0x4c   : > { %636 = vmatpush.bf16.msra.mxu0 %v2152_v31  ;;  %v2225_v39 = vld [vmem:[#allocation6 + $0x138] sm:$0xf0]  ;;  %v2325_v45 = vld [vmem:[#allocation6 + $0xf4] sm:$0xf]  ;;  %v2319_v48 = vld [vmem:[#allocation6 + $0xc4] sm:$0xf] }
  0x4d   : > { %v2228_v41 = vor.u32 %v2331_v38, %v2225_v39  ;;  %v2313_v57 = vld [vmem:[#allocation6 + $0x94] sm:$0xf]  ;;  %v2153_v58 = vld [vmem:[#allocation6 + $0xa8] sm:$0xf0]  ;;  %v2129_v63 = vld [vmem:[#allocation6 + $0x78] sm:$0xf0] }
  0x4e   : > { %v2156_v60 = vor.u32 %v2313_v57, %v2153_v58  ;;  %v2301_v6 = vld [vmem:[#allocation6 + $0x34] sm:$0xf]  ;;  %v2295_v9 = vld [vmem:[#allocation6 + $0x4] sm:$0xf]  ;;  %v2263_v17 = vld [vmem:[#allocation6 + $0x160] sm:$0xf] }
  0x4f   : > { %695 = vmatpush.bf16.msra.mxu2 %v2136_v34  ;;  %721 = vmatpush.bf16.msra.mxu3 %v2212_v62  ;;  %v2249_v34 = vld [vmem:[#allocation6 + $0x168] sm:$0xf0]  ;;  %v2307_v62 = vld [vmem:[#allocation6 + $0x64] sm:$0xf]  ;;  %v2215_v39 = vld [vmem:[#allocation6 + $0x100] sm:$0xf] }
  0x50   : > { %637 = vmatpush.bf16.msra.mxu0 %v2128_v37  ;;  %v2252_v36 = vor.u32 %v2337_v33, %v2249_v34  ;;  %v2132_v1 = vor.u32 %v2307_v62, %v2129_v63  ;;  %v2167_v58 = vld [vmem:[#allocation6 + $0xa0] sm:$0xf]  ;;  %v383_v62 = vperm.slane %v2884_v20, 3  ;;  %v2143_v63 = vld [vmem:[#allocation6 + $0x70] sm:$0xf]  ;;  %s2287_s20 = sld [smem:[#allocation9 + $0x3]] }
  0x51   : > { %s2288_s26 = sld [smem:[#allocation9 + $0x4]]  ;;  %vm1782_vm5 = vcmask 1044484   ;;  %vm1785_vm6 = vcmask 1045509   ;;  %vm1788_vm7 = vcmask 1046534   ;;  %vm1791_vm8 = vcmask 1047559   ;;  %s2076_s19 = sshll.u32 %s2838_s13, 3 }
  0x52   : > { %661 = vmatpush.bf16.msra.mxu1 %v2252_v36  ;;  %v2241_v36 = vld [vmem:[#allocation6 + $0x148] sm:$0xf0]  ;;  %s2289_s29 = sld [smem:[#allocation9 + $0x5]]  ;;  %s2291_s14 = sshll.u32 %s2748_s25, 3 }
  0x53   : > { %696 = vmatpush.bf16.msra.mxu2 %v2112_v40  ;;  %722 = vmatpush.bf16.msra.mxu3 %v2188_v3  ;;  %s316_s25 = scalar_lea.vmem [#allocation10], %s2076_s19  ;;  %s2628_s17 = scalar_lea.hbm %s3177_s6, 16 }
  0x54   : > { %638 = vmatpush.bf16.msra.mxu0 %v2104_v43 }
  0x56   : > { %662 = vmatpush.bf16.msra.mxu1 %v2228_v41  ;;  %v2327_v41 = vld [vmem:[#allocation6 + $0x104] sm:$0xf] }
  0x57   : > { %697 = vmatpush.bf16.msra.mxu2 %v2088_v46  ;;  %723 = vmatpush.bf16.msra.mxu3 %v2164_v7  ;;  %v2201_v46 = vld [vmem:[#allocation6 + $0x108] sm:$0xf0] }
  0x58   : > { %639 = vmatpush.bf16.msra.mxu0 %v2080_v49  ;;  %v2204_v47 = vor.u32 %v2325_v45, %v2201_v46  ;;  %v2177_v49 = vld [vmem:[#allocation6 + $0xd8] sm:$0xf0]  ;;  %v2105_v7 = vld [vmem:[#allocation6 + $0x48] sm:$0xf0] }
  0x59   : > { %v2180_v54 = vor.u32 %v2319_v48, %v2177_v49  ;;  %v2108_v8 = vor.u32 %v2301_v6, %v2105_v7  ;;  %v2191_v48 = vld [vmem:[#allocation6 + $0xd0] sm:$0xf]  ;;  %v2324_v49 = vld [vmem:[#allocation6 + $0xe4] sm:$0xf0] }
  0x5a   : > { %698 = vmatmul.bf16.vlgmr.msra.gmra.mxu2 %v2858_v50  ;;  %663 = vmatpush.bf16.msra.mxu1 %v2204_v47 }
  0x5b   : > { %640 = vmatmul.bf16.vlgmr.msra.gmra.mxu0 %v2858_v50  ;;  %724 = vmatpush.bf16.msra.mxu3 %v2140_v10  ;;  %v2081_v10 = vld [vmem:[#allocation6 + $0x18] sm:$0xf0] }
  0x5e   : > { %664 = vmatpush.bf16.msra.mxu1 %v2180_v54  ;;  %v2192_v54 = vor.u32 %v2324_v49, %v2191_v48 }
  0x5f   : > { %725 = vmatpush.bf16.msra.mxu3 %v2116_v13  ;;  %v2084_v13 = vor.u32 %v2295_v9, %v2081_v10  ;;  %v2306_v9 = vld [vmem:[#allocation6 + $0x54] sm:$0xf0]  ;;  %v2303_v10 = vld [vmem:[#allocation6 + $0x44] sm:$0xf] }
  0x62   : > { %665 = vmatpush.bf16.msra.mxu1 %v2156_v60  ;;  %v2315_v60 = vld [vmem:[#allocation6 + $0xa4] sm:$0xf] }
  0x63   : > { %726 = vmatpush.bf16.msra.mxu3 %v2092_v18  ;;  %v2342_v18 = vld [vmem:[#allocation6 + $0x174] sm:$0xf0] }
  0x66   : > { %727 = vmatmul.bf16.vlgmr.msra.gmra.mxu3 %v2858_v50  ;;  %666 = vmatpush.bf16.msra.mxu1 %v2132_v1  ;;  %v2309_v1 = vld [vmem:[#allocation6 + $0x74] sm:$0xf] }
  0x6a   : > { %703 = vmatmul.bf16.gmra.mxu2 %v2864_v53  ;;  %667 = vmatpush.bf16.msra.mxu1 %v2108_v8  ;;  %v2119_v8 = vld [vmem:[#allocation6 + $0x40] sm:$0xf] }
  0x6b   : > { %645 = vmatmul.bf16.gmra.mxu0 %v2864_v53 }
  0x6e   : > { %668 = vmatpush.bf16.msra.mxu1 %v2084_v13 }
  0x71   : > { %669 = vmatmul.bf16.vlgmr.msra.gmra.mxu1 %v2858_v50 }
  0x76   : > { %732 = vmatmul.bf16.gmra.mxu3 %v2864_v53 }
  0x7a   : > { %708 = vmatmul.bf16.gmra.mxu2 %v2870_v4 }
  0x7b   : > { %650 = vmatmul.bf16.gmra.mxu0 %v2870_v4 }
  0x81   : > { %674 = vmatmul.bf16.gmra.mxu1 %v2864_v53 }
  0x86   : > { %737 = vmatmul.bf16.gmra.mxu3 %v2870_v4 }
  0x8a   : > { %713 = vmatmul.bf16.gmra.mxu2 %v2876_v19 }
  0x8b   : > { %655 = vmatmul.bf16.gmra.mxu0 %v2876_v19 }
  0x91   : > { %679 = vmatmul.bf16.gmra.mxu1 %v2870_v4 }
  0x96   : > { %742 = vmatmul.bf16.gmra.mxu3 %v2876_v19 }
  0xa1   : > { %684 = vmatmul.bf16.gmra.mxu1 %v2876_v19 }
  0xd8   : > { %v641_v22 = vpop.f32.mrf.mxu0 }
  0xd9   : > { %v642_v24 = vadd.f32 %v641_v22, %v2887_v21  ;;  %v2339_v22 = vld [vmem:[#allocation6 + $0x164] sm:$0xf] }
  0xdb   : > { %v806_v27 = vmul.f32 0.088388346, %v642_v24 }
  0xdd   : > { %v699_v25 = vpop.f32.mrf.mxu2 }
  0xde   : > { %v700_v26 = vadd.f32 %v699_v25, %v2890_v23  ;;  %v2264_v25 = vor.u32 %v2342_v18, %v2263_v17  ;;  %v2297_v17 = vld [vmem:[#allocation6 + $0x14] sm:$0xf] }
  0xe0   : > { %829 = vmatpush.xpose.msrb.mxu2 %v700_v26  ;;  %v643_v28 = vpop.f32.mrf.mxu0  ;;  %v2265_v26 = vld [vmem:[#allocation6 + $0x178] sm:$0xf0]  ;;  %748 = vmatpush.bf16.msrb.mxu0 %v2264_v25 }
  0xe1   : > { %v644_v30 = vadd.f32 %v643_v28, %v2887_v21 }
  0xe3   : > { %830 = vmatmul.f32.vlgmr.msrb.gmra.mxu2 %v806_v27  ;;  %v807_v35 = vmul.f32 0.088388346, %v644_v30  ;;  %v2268_v27 = vor.u32 %v2339_v22, %v2265_v26  ;;  %v2239_v30 = vld [vmem:[#allocation6 + $0x130] sm:$0xf] }
  0xe5   : > { %v701_v29 = vpop.f32.mrf.mxu2  ;;  %777 = vmatpush.bf16.msrb.mxu1 %v2268_v27 }
  0xe6   : > { %v702_v31 = vadd.f32 %v701_v29, %v2890_v23 }
  0xe8   : > { %849 = vmatpush.xpose.msrb.mxu3 %v702_v31  ;;  %v646_v32 = vpop.f32.mrf.mxu0  ;;  %v2336_v31 = vld [vmem:[#allocation6 + $0x144] sm:$0xf0] }
  0xe9   : > { %v647_v37 = vadd.f32 %v646_v32, %v2887_v21  ;;  %v2333_v32 = vld [vmem:[#allocation6 + $0x134] sm:$0xf]  ;;  %v728_v34 = vpop.f32.mrf.mxu3 }
  0xeb   : > { %850 = vmatmul.f32.vlgmr.msrb.gmra.mxu3 %v807_v35  ;;  %v808_v43 = vmul.f32 0.088388346, %v647_v37  ;;  %v2240_v35 = vor.u32 %v2336_v31, %v2239_v30  ;;  %v2244_v37 = vor.u32 %v2333_v32, %v2241_v36 }
  0xed   : > { %v704_v40 = vpop.f32.mrf.mxu2  ;;  %749 = vmatpush.bf16.msrb.mxu0 %v2240_v35  ;;  %778 = vmatpush.bf16.msrb.mxu1 %v2244_v37 }
  0xee   : > { %v705_v42 = vadd.f32 %v704_v40, %v2890_v23  ;;  %v2330_v40 = vld [vmem:[#allocation6 + $0x114] sm:$0xf0] }
  0xf0   : > { %869 = vmatpush.xpose.msra.mxu2 %v705_v42  ;;  %v648_v44 = vpop.f32.mrf.mxu0  ;;  %v2216_v42 = vor.u32 %v2330_v40, %v2215_v39 }
  0xf1   : > { %v649_v52 = vadd.f32 %v648_v44, %v2887_v21 }
  0xf2   : > { %750 = vmatpush.bf16.msrb.mxu0 %v2216_v42 }
  0xf3   : > { %870 = vmatmul.f32.vlgmr.msra.gmra.mxu2 %v808_v43  ;;  %v809_v59 = vmul.f32 0.088388346, %v649_v52  ;;  %v2217_v43 = vld [vmem:[#allocation6 + $0x118] sm:$0xf0]  ;;  %v730_v52 = vpop.f32.mrf.mxu3 }
  0xf4   : > { %v2220_v44 = vor.u32 %v2327_v41, %v2217_v43  ;;  %v731_v25 = vadd.f32 %v730_v52, %v383_v62  ;;  %v2941_v52 = vperm.slane %v2884_v20, 1 }
  0xf5   : > { %v706_v51 = vpop.f32.mrf.mxu2 }
  0xf6   : > { %v707_v55 = vadd.f32 %v706_v51, %v2890_v23  ;;  %779 = vmatpush.bf16.msrb.mxu1 %v2220_v44  ;;  %v2321_v51 = vld [vmem:[#allocation6 + $0xd4] sm:$0xf]  ;;  %751 = vmatpush.bf16.msrb.mxu0 %v2192_v54  ;;  %v670_v54 = vpop.f32.mrf.mxu1 }
  0xf8   : > { %889 = vmatpush.xpose.msra.mxu3 %v707_v55  ;;  %v651_v56 = vpop.f32.mrf.mxu0  ;;  %v2193_v55 = vld [vmem:[#allocation6 + $0xe8] sm:$0xf0] }
  0xf9   : > { %v652_v61 = vadd.f32 %v651_v56, %v2887_v21  ;;  %v2196_v56 = vor.u32 %v2321_v51, %v2193_v55  ;;  %v671_v55 = vadd.f32 %v670_v54, %v2941_v52 }
  0xfb   : > { %890 = vmatmul.f32.vlgmr.msra.gmra.mxu3 %v809_v59  ;;  %v810_v3 = vmul.f32 0.088388346, %v652_v61  ;;  %780 = vmatpush.bf16.msrb.mxu1 %v2196_v56  ;;  %v2318_v59 = vld [vmem:[#allocation6 + $0xb4] sm:$0xf0] }
  0xfd   : > { %v709_v0 = vpop.f32.mrf.mxu2 }
  0xfe   : > { %v710_v2 = vadd.f32 %v709_v0, %v2890_v23  ;;  %v2312_v0 = vld [vmem:[#allocation6 + $0x84] sm:$0xf0] }
 0x100   : > { %909 = vmatpush.xpose.msrb.mxu2 %v710_v2  ;;  %v653_v5 = vpop.f32.mrf.mxu0  ;;  %v733_v2 = vpop.f32.mrf.mxu3 }
 0x101   : > { %v654_v12 = vadd.f32 %v653_v5, %v2887_v21  ;;  %v2145_v5 = vld [vmem:[#allocation6 + $0x88] sm:$0xf0]  ;;  %v2911_v6 = vadd.f32 %v733_v2, %v383_v62 }
 0x102   : > { %v2148_v7 = vor.u32 %v2309_v1, %v2145_v5 }
 0x103   : > { %910 = vmatmul.f32.vlgmr.msrb.gmra.mxu2 %v810_v3  ;;  %v811_v16 = vmul.f32 0.088388346, %v654_v12  ;;  %v2144_v3 = vor.u32 %v2312_v0, %v2143_v63  ;;  %v2121_v12 = vld [vmem:[#allocation6 + $0x58] sm:$0xf0] }
 0x104   : > { %v2124_v13 = vor.u32 %v2303_v10, %v2121_v12 }
 0x105   : > { %v711_v11 = vpop.f32.mrf.mxu2 }
 0x106   : > { %v712_v14 = vadd.f32 %v711_v11, %v2890_v23  ;;  %v2120_v11 = vor.u32 %v2306_v9, %v2119_v8 }
 0x108   : > { %929 = vmatpush.xpose.msrb.mxu3 %v712_v14  ;;  %v656_v15 = vpop.f32.mrf.mxu0  ;;  %v729_v14 = vadd.f32 %v728_v34, %v383_v62  ;;  %v735_v18 = vpop.f32.mrf.mxu3 }
 0x109   : > { %v657_v24 = vadd.f32 %v656_v15, %v2887_v21  ;;  %v2095_v15 = vld [vmem:[#allocation6 + $0x10] sm:$0xf]  ;;  %v2913_v26 = vadd.f32 %v735_v18, %v383_v62 }
 0x10b   : > { %930 = vmatmul.f32.vlgmr.msrb.gmra.mxu3 %v811_v16  ;;  %v812_v33 = vmul.f32 0.088388346, %v657_v24  ;;  %v2300_v16 = vld [vmem:[#allocation6 + $0x24] sm:$0xf0]  ;;  %v2097_v24 = vld [vmem:[#allocation6 + $0x28] sm:$0xf0] }
 0x10c   : > { %v2096_v22 = vor.u32 %v2300_v16, %v2095_v15  ;;  %v2100_v27 = vor.u32 %v2297_v17, %v2097_v24 }
 0x10d   : > { %v714_v28 = vpop.f32.mrf.mxu2 }
 0x10e   : > { %v715_v29 = vadd.f32 %v714_v28, %v2890_v23 }
 0x110   : > { %949 = vmatpush.xpose.msra.mxu2 %v715_v29  ;;  %v658_v38 = vpop.f32.mrf.mxu0  ;;  %v738_v28 = vpop.f32.mrf.mxu3 }
 0x111   : > { %v659_v46 = vadd.f32 %v658_v38, %v2887_v21  ;;  %v2168_v21 = vor.u32 %v2318_v59, %v2167_v58  ;;  %v739_v29 = vadd.f32 %v738_v28, %v383_v62 }
 0x113   : > { %950 = vmatmul.f32.vlgmr.msra.gmra.mxu2 %v812_v33  ;;  %v813_v57 = vmul.f32 0.088388346, %v659_v46  ;;  %752 = vmatpush.bf16.msrb.mxu0 %v2168_v21 }
 0x115   : > { %v716_v45 = vpop.f32.mrf.mxu2 }
 0x116   : > { %v717_v47 = vadd.f32 %v716_v45, %v2890_v23  ;;  %v2169_v23 = vld [vmem:[#allocation6 + $0xb8] sm:$0xf0] }
 0x117   : > { %v2172_v61 = vor.u32 %v2315_v60, %v2169_v23  ;;  %753 = vmatpush.bf16.msrb.mxu0 %v2144_v3 }
 0x118   : > { %969 = vmatpush.xpose.msra.mxu3 %v717_v47  ;;  %v740_v30 = vpop.f32.mrf.mxu3 }
 0x119   : > { %781 = vmatpush.bf16.msrb.mxu1 %v2172_v61  ;;  %v741_v34 = vadd.f32 %v740_v30, %v383_v62 }
 0x11b   : > { %970 = vmatmul.f32.vlgmr.msra.gmra.mxu3 %v813_v57  ;;  %754 = vmatpush.bf16.msrb.mxu0 %v2120_v11  ;;  %v1248_v57 = vmul.f32 0.088388346, %v671_v55 }
 0x11d   : > { %782 = vmatpush.bf16.msrb.mxu1 %v2148_v7 }
 0x11f   : > { %755 = vmatpush.bf16.msrb.mxu0 %v2096_v22 }
 0x120   : > { %v743_v31 = vpop.f32.mrf.mxu3 }
 0x121   : > { %783 = vmatpush.bf16.msrb.mxu1 %v2124_v13  ;;  %v2919_v32 = vadd.f32 %v743_v31, %v383_v62  ;;  %v2961_v13 = vperm.slane %v2884_v20, 4 }
 0x122   : > { %756 = vmatmul.bf16.vlgmr.msrb.gmra.mxu0 %v2858_v50 }
 0x123   : > { %1271 = vmatpush.xpose.msra.mxu0 %v729_v14 }
 0x125   : > { %784 = vmatpush.bf16.msrb.mxu1 %v2100_v27 }
 0x127   : > { %1351 = vmatpush.xpose.msrb.mxu0 %v739_v29 }
 0x128   : > { %v745_v33 = vpop.f32.mrf.mxu3  ;;  %785 = vmatmul.bf16.vlgmr.msrb.gmra.mxu1 %v2858_v50 }
 0x129   : > { %1291 = vmatpush.xpose.msra.mxu1 %v731_v25  ;;  %v2921_v35 = vadd.f32 %v745_v33, %v383_v62 }
 0x12d   : > { %1371 = vmatpush.xpose.msrb.mxu1 %v741_v34 }
 0x132   : > { %761 = vmatmul.bf16.gmra.mxu0 %v2864_v53 }
 0x138   : > { %790 = vmatmul.bf16.gmra.mxu1 %v2864_v53 }
 0x142   : > { %766 = vmatmul.bf16.gmra.mxu0 %v2870_v4 }
 0x148   : > { %795 = vmatmul.bf16.gmra.mxu1 %v2870_v4 }
 0x152   : > { %771 = vmatmul.bf16.gmra.mxu0 %v2876_v19 }
 0x158   : > { %800 = vmatmul.bf16.gmra.mxu1 %v2876_v19 }
 0x162   : > { %1272 = vmatmul.f32.vlgmr.msra.gmra.mxu0 %v1248_v57 }
 0x166   : > { %v831_v36 = vpop.f32.mrf.mxu2 }
 0x167   : > { %v975_v37 = vsel %vm974_vm0, %v831_v36, -inf }
 0x168   : > { %976 = vmax.xlane.f32.xlu0 %v975_v37 }
 0x16e   : > { %v851_v38 = vpop.f32.mrf.mxu3 }
 0x16f   : > { %v978_v39 = vsel %vm974_vm0, %v851_v38, -inf }
 0x170   : > { %979 = vmax.xlane.f32.xlu0 %v978_v39 }
 0x176   : > { %v871_v40 = vpop.f32.mrf.mxu2 }
 0x177   : > { %v981_v50 = vsel %vm974_vm0, %v871_v40, -inf }
 0x178   : > { %982 = vmax.xlane.f32.xlu1 %v981_v50 }
 0x17e   : > { %v891_v53 = vpop.f32.mrf.mxu3 }
 0x17f   : > { %v984_v41 = vsel %vm974_vm0, %v891_v53, -inf }
 0x180   : > { %985 = vmax.xlane.f32.xlu1 %v984_v41 }
 0x186   : > { %v911_v42 = vpop.f32.mrf.mxu2 }
 0x187   : > { %v987_v43 = vsel %vm974_vm0, %v911_v42, -inf }
 0x188   : > { %988 = vmax.xlane.f32.xlu2 %v987_v43 }
 0x18e   : > { %v931_v44 = vpop.f32.mrf.mxu3 }
 0x18f   : > { %v990_v4 = vsel %vm974_vm0, %v931_v44, -inf }
 0x190   : > { %991 = vmax.xlane.f32.xlu2 %v990_v4 }
 0x196   : > { %v951_v45 = vpop.f32.mrf.mxu2 }
 0x197   : > { %v993_v46 = vsel %vm974_vm0, %v951_v45, -inf }
 0x198   : > { %994 = vmax.xlane.f32.xlu0 %v993_v46  ;;  %v672_v46 = vpop.f32.mrf.mxu1 }
 0x19e   : > { %v2936_v47 = vpop.f32.mrf.mxu3 }
 0x19f   : > { %v996_v19 = vsel %vm974_vm0, %v2936_v47, -inf  ;;  %v757_v14 = vpop.f32.mrf.mxu0 }
 0x1a0   : > { %997 = vmax.xlane.f32.xlu1 %v996_v19  ;;  %v758_v15 = vadd.f32 %v757_v14, %v2961_v13 }
 0x1a2   : > { %1082 = vmatpush.msrb.mxu2 %v758_v15 }
 0x1a7   : > { %v759_v25 = vpop.f32.mrf.mxu0 }
 0x1a8   : > { %v760_v27 = vadd.f32 %v759_v25, %v2961_v13 }
 0x1aa   : > { %1105 = vmatpush.msrb.mxu3 %v760_v27 }
 0x1db   : > { %v977_v48 = vpop.xlane.xlu0 %976 }
 0x1dc   : > { %v999_v49 = vsub.f32 %v831_v36, %v977_v48 }
 0x1de   : > { %v1007_v51 = vmul.f32 1.442695, %v999_v49 }
 0x1e0   : > { %2427 = vpow2.f32 %v1007_v51  ;;  %v2985_v51 = vpop.f32.mrf.mxu1 }
 0x1e3   : > { %v980_v56 = vpop.xlane.xlu0 %979 }
 0x1e4   : > { %v1000_v58 = vsub.f32 %v851_v38, %v980_v56 }
 0x1e6   : > { %v2944_v59 = vpop.eup %2427  ;;  %v1009_v60 = vmul.f32 1.442695, %v1000_v58 }
 0x1e7   : > { %v1023_v21 = vsel %vm974_vm0, %v2944_v59, 0.0 }
 0x1e8   : > { %2429 = vpow2.f32 %v1009_v60  ;;  %1024 = vadd.xlane.f32.xlu2 %v1023_v21  ;;  %v2994_v21 = vpop.f32.mrf.mxu1 }
 0x1eb   : > { %v983_v23 = vpop.xlane.xlu1 %982 }
 0x1ec   : > { %v1001_v61 = vsub.f32 %v871_v40, %v983_v23 }
 0x1ee   : > { %v2948_v62 = vpop.eup %2429  ;;  %v1011_v63 = vmul.f32 1.442695, %v1001_v61 }
 0x1ef   : > { %v1026_v0 = vsel %vm974_vm0, %v2948_v62, 0.0 }
 0x1f0   : > { %2431 = vpow2.f32 %v1011_v63  ;;  %1027 = vadd.xlane.f32.xlu0 %v1026_v0 }
 0x1f3   : > { %v986_v1 = vpop.xlane.xlu1 %985 }
 0x1f4   : > { %v1002_v2 = vsub.f32 %v891_v53, %v986_v1  ;;  %v762_v53 = vpop.f32.mrf.mxu0 }
 0x1f5   : > { %v763_v43 = vadd.f32 %v762_v53, %v2961_v13 }
 0x1f6   : > { %v2952_v3 = vpop.eup %2431  ;;  %v1013_v5 = vmul.f32 1.442695, %v1002_v2 }
 0x1f7   : > { %v1029_v7 = vsel %vm974_vm0, %v2952_v3, 0.0  ;;  %1128 = vmatpush.msra.mxu2 %v763_v43 }
 0x1f8   : > { %2433 = vpow2.f32 %v1013_v5  ;;  %1030 = vadd.xlane.f32.xlu1 %v1029_v7 }
 0x1fb   : > { %v989_v8 = vpop.xlane.xlu2 %988 }
 0x1fc   : > { %v1003_v9 = vsub.f32 %v911_v42, %v989_v8  ;;  %v764_v41 = vpop.f32.mrf.mxu0 }
 0x1fd   : > { %v765_v4 = vadd.f32 %v764_v41, %v2961_v13 }
 0x1fe   : > { %v2956_v10 = vpop.eup %2433  ;;  %v1015_v11 = vmul.f32 1.442695, %v1003_v9 }
 0x1ff   : > { %v1032_v12 = vsel %vm974_vm0, %v2956_v10, 0.0  ;;  %1151 = vmatpush.msra.mxu3 %v765_v4 }
 0x200   : > { %2435 = vpow2.f32 %v1015_v11  ;;  %1033 = vadd.xlane.f32.xlu2 %v1032_v12 }
 0x203   : > { %v992_v16 = vpop.xlane.xlu2 %991 }
 0x204   : > { %v1004_v17 = vsub.f32 %v931_v44, %v992_v16  ;;  %v767_v42 = vpop.f32.mrf.mxu0 }
 0x205   : > { %v768_v55 = vadd.f32 %v767_v42, %v2961_v13 }
 0x206   : > { %v2964_v18 = vpop.eup %2435  ;;  %v1017_v22 = vmul.f32 1.442695, %v1004_v17 }
 0x207   : > { %v1035_v24 = vsel %vm974_vm0, %v2964_v18, 0.0 }
 0x208   : > { %2437 = vpow2.f32 %v1017_v22  ;;  %1036 = vadd.xlane.f32.xlu0 %v1035_v24 }
 0x20b   : > { %v995_v28 = vpop.xlane.xlu0 %994 }
 0x20c   : > { %v1005_v29 = vsub.f32 %v951_v45, %v995_v28  ;;  %v769_v44 = vpop.f32.mrf.mxu0 }
 0x20d   : > { %v770_v61 = vadd.f32 %v769_v44, %v2961_v13 }
 0x20e   : > { %v2969_v30 = vpop.eup %2437  ;;  %v1019_v31 = vmul.f32 1.442695, %v1005_v29  ;;  %v385_v29 = vperm.slane %v2884_v20, 5 }
 0x20f   : > { %v1038_v33 = vsel %vm974_vm0, %v2969_v30, 0.0 }
 0x210   : > { %2439 = vpow2.f32 %v1019_v31  ;;  %1039 = vadd.xlane.f32.xlu1 %v1038_v33 }
 0x213   : > { %v998_v34 = vpop.xlane.xlu1 %997 }
 0x214   : > { %v1006_v36 = vsub.f32 %v2936_v47, %v998_v34  ;;  %v772_v45 = vpop.f32.mrf.mxu0  ;;  %v673_v47 = vadd.f32 %v672_v46, %v2941_v52 }
 0x215   : > { %v773_v2 = vadd.f32 %v772_v45, %v2961_v13 }
 0x216   : > { %v2974_v37 = vpop.eup %2439  ;;  %v1021_v38 = vmul.f32 1.442695, %v1006_v36  ;;  %v1249_v19 = vmul.f32 0.088388346, %v673_v47 }
 0x217   : > { %v1041_v39 = vsel %vm974_vm0, %v2974_v37, 0.0 }
 0x218   : > { %2441 = vpow2.f32 %v1021_v38  ;;  %1042 = vadd.xlane.f32.xlu2 %v1041_v39  ;;  %1292 = vmatmul.f32.vlgmr.msra.gmra.mxu1 %v1249_v19  ;;  %v676_v38 = vadd.f32 %v2985_v51, %v2941_v52 }
 0x21a   : > { %v1250_v39 = vmul.f32 0.088388346, %v676_v38 }
 0x21c   : > { %v774_v48 = vpop.f32.mrf.mxu0 }
 0x21d   : > { %v775_v15 = vadd.f32 %v774_v48, %v2961_v13 }
 0x21e   : > { %v2978_v40 = vpop.eup %2441 }
 0x21f   : > { %v1044_v50 = vsel %vm974_vm0, %v2978_v40, 0.0 }
 0x220   : > { %1045 = vadd.xlane.f32.xlu0 %v1044_v50  ;;  %v678_v50 = vadd.f32 %v2994_v21, %v2941_v52 }
 0x222   : > { %v1251_v53 = vmul.f32 0.088388346, %v678_v50 }
 0x224   : > { %v2988_v56 = vpop.f32.mrf.mxu0 }
 0x225   : > { %v1416_v60 = vsel %vm974_vm0, %v2988_v56, -inf }
 0x228   : > { %1417 = vmax.xlane.f32.xlu0 %v1416_v60 }
 0x25b   : > { %v1025_v49 = vpop.xlane.xlu2 %1024 }
 0x25c   : > { %2443 = vrcp.f32 %v1025_v49 }
 0x262   : > { %v2444_v54 = vpop.eup %2443 }
 0x263   : > { %v1055_v57 = vmul.f32 %v2444_v54, %v2944_v59  ;;  %v1028_v58 = vpop.xlane.xlu0 %1027  ;;  %v680_v59 = vpop.f32.mrf.mxu1 }
 0x264   : > { %2445 = vrcp.f32 %v1028_v58  ;;  %v681_v8 = vadd.f32 %v680_v59, %v2941_v52 }
 0x265   : > { %2269 = vmatmul.msk.f32.vlgmr.msrb.gmra.mxu2 %vm1063_vm1, %v1055_v57 }
 0x266   : > { %1174 = vmatpush.msrb.mxu2 %v768_v55  ;;  %v1252_v9 = vmul.f32 0.088388346, %v681_v8 }
 0x268   : > { %1352 = vmatmul.f32.vlgmr.msrb.gmra.mxu0 %v1252_v9 }
 0x26a   : > { %v2446_v23 = vpop.eup %2445 }
 0x26b   : > { %v1056_v63 = vmul.f32 %v2446_v23, %v2948_v62  ;;  %v1031_v0 = vpop.xlane.xlu1 %1030  ;;  %v682_v11 = vpop.f32.mrf.mxu1 }
 0x26c   : > { %2447 = vrcp.f32 %v1031_v0  ;;  %v683_v62 = vadd.f32 %v682_v11, %v2941_v52 }
 0x26d   : > { %2270 = vmatmul.msk.f32.vlgmr.msrb.gmra.mxu3 %vm1063_vm1, %v1056_v63 }
 0x26e   : > { %1197 = vmatpush.msrb.mxu3 %v770_v61  ;;  %v1253_v12 = vmul.f32 0.088388346, %v683_v62 }
 0x270   : > { %1372 = vmatmul.f32.vlgmr.msrb.gmra.mxu1 %v1253_v12 }
 0x272   : > { %v2448_v1 = vpop.eup %2447 }
 0x273   : > { %v1057_v5 = vmul.f32 %v2448_v1, %v2952_v3  ;;  %v1034_v7 = vpop.xlane.xlu2 %1033  ;;  %v685_v17 = vpop.f32.mrf.mxu1 }
 0x274   : > { %2449 = vrcp.f32 %v1034_v7 }
 0x275   : > { %2271 = vmatmul.msk.f32.vlgmr.msra.gmra.mxu2 %vm1063_vm1, %v1057_v5 }
 0x276   : > { %1220 = vmatpush.msra.mxu2 %v773_v2 }
 0x27a   : > { %v2450_v14 = vpop.eup %2449 }
 0x27b   : > { %v1058_v16 = vmul.f32 %v2450_v14, %v2956_v10  ;;  %v1037_v3 = vpop.xlane.xlu0 %1036  ;;  %v687_v27 = vpop.f32.mrf.mxu1 }
 0x27c   : > { %2451 = vrcp.f32 %v1037_v3  ;;  %v688_v41 = vadd.f32 %v687_v27, %v2941_v52 }
 0x27d   : > { %2272 = vmatmul.msk.f32.vlgmr.msra.gmra.mxu3 %vm1063_vm1, %v1058_v16 }
 0x27e   : > { %1243 = vmatpush.msra.mxu3 %v775_v15  ;;  %v1255_v42 = vmul.f32 0.088388346, %v688_v41 }
 0x282   : > { %v2452_v22 = vpop.eup %2451 }
 0x283   : > { %v1059_v24 = vmul.f32 %v2452_v22, %v2964_v18  ;;  %v1040_v25 = vpop.xlane.xlu1 %1039  ;;  %v786_v31 = vpop.f32.mrf.mxu1 }
 0x284   : > { %2453 = vrcp.f32 %v1040_v25  ;;  %v787_v18 = vadd.f32 %v786_v31, %v385_v29 }
 0x285   : > { %2273 = vmatmul.msk.f32.vlgmr.msrb.gmra.mxu2 %vm1063_vm1, %v1059_v24 }
 0x286   : > { %1311 = vmatpush.xpose.msrb.mxu2 %v2911_v6  ;;  %1522 = vmatpush.msra.mxu0 %v787_v18 }
 0x28a   : > { %v2454_v13 = vpop.eup %2453 }
 0x28b   : > { %v1060_v28 = vmul.f32 %v2454_v13, %v2969_v30  ;;  %v1043_v10 = vpop.xlane.xlu2 %1042  ;;  %v788_v6 = vpop.f32.mrf.mxu1 }
 0x28c   : > { %2455 = vrcp.f32 %v1043_v10  ;;  %v789_v30 = vadd.f32 %v788_v6, %v385_v29 }
 0x28d   : > { %2274 = vmatmul.msk.f32.vlgmr.msrb.gmra.mxu3 %vm1063_vm1, %v1060_v28 }
 0x28e   : > { %1331 = vmatpush.xpose.msrb.mxu3 %v2913_v26  ;;  %1545 = vmatpush.msra.mxu1 %v789_v30 }
 0x292   : > { %v2456_v33 = vpop.eup %2455 }
 0x293   : > { %v1061_v34 = vmul.f32 %v2456_v33, %v2974_v37  ;;  %v1046_v36 = vpop.xlane.xlu0 %1045  ;;  %v686_v37 = vadd.f32 %v685_v17, %v2941_v52  ;;  %v791_v43 = vpop.f32.mrf.mxu1 }
 0x294   : > { %2457 = vrcp.f32 %v1046_v36  ;;  %v792_v44 = vadd.f32 %v791_v43, %v385_v29 }
 0x295   : > { %2275 = vmatmul.msk.f32.vlgmr.msra.gmra.mxu2 %vm1063_vm1, %v1061_v34 }
 0x296   : > { %1391 = vmatpush.xpose.msra.mxu2 %v2919_v32  ;;  %v1254_v32 = vmul.f32 0.088388346, %v686_v37 }
 0x29a   : > { %v2458_v20 = vpop.eup %2457 }
 0x29b   : > { %v1062_v26 = vmul.f32 %v2458_v20, %v2978_v40  ;;  %v793_v40 = vpop.f32.mrf.mxu1  ;;  %v1418_v5 = vpop.xlane.xlu0 %1417 }
 0x29c   : > { %v794_v4 = vadd.f32 %v793_v40, %v385_v29  ;;  %v1440_v9 = vsub.f32 %v2988_v56, %v1418_v5 }
 0x29d   : > { %2276 = vmatmul.msk.f32.vlgmr.msra.gmra.mxu3 %vm1063_vm1, %v1062_v26  ;;  %1312 = vmatmul.f32.vlgmr.msrb.gmra.mxu2 %v1250_v39 }
 0x29e   : > { %1411 = vmatpush.xpose.msra.mxu3 %v2921_v35  ;;  %1568 = vmatpush.msrb.mxu2 %v792_v44  ;;  %v1448_v15 = vmul.f32 1.442695, %v1440_v9 }
 0x2a0   : > { %2459 = vpow2.f32 %v1448_v15 }
 0x2a3   : > { %v796_v45 = vpop.f32.mrf.mxu1 }
 0x2a4   : > { %v797_v46 = vadd.f32 %v796_v45, %v385_v29 }
 0x2a5   : > { %1332 = vmatmul.f32.vlgmr.msrb.gmra.mxu3 %v1251_v53  ;;  %1392 = vmatmul.f32.vlgmr.msra.gmra.mxu2 %v1254_v32 }
 0x2a6   : > { %1591 = vmatpush.msrb.mxu3 %v794_v4  ;;  %1614 = vmatpush.msrb.mxu0 %v797_v46  ;;  %v2460_v17 = vpop.eup %2459 }
 0x2a7   : > { %v1464_v22 = vsel %vm974_vm0, %v2460_v17, 0.0 }
 0x2ab   : > { %v798_v35 = vpop.f32.mrf.mxu1 }
 0x2ac   : > { %v799_v47 = vadd.f32 %v798_v35, %v385_v29 }
 0x2ad   : > { %1412 = vmatmul.f32.vlgmr.msra.gmra.mxu3 %v1255_v42 }
 0x2ae   : > { %1637 = vmatpush.msrb.mxu1 %v799_v47 }
 0x2b3   : > { %v801_v19 = vpop.f32.mrf.mxu1 }
 0x2b4   : > { %v802_v48 = vadd.f32 %v801_v19, %v385_v29 }
 0x2b6   : > { %1660 = vmatpush.msra.mxu2 %v802_v48 }
 0x2bb   : > { %v803_v49 = vpop.f32.mrf.mxu1 }
 0x2bc   : > { %v804_v51 = vadd.f32 %v803_v49, %v385_v29 }
 0x2be   : > { %1683 = vmatpush.msra.mxu3 %v804_v51 }
 0x2c3   : > { %v1293_v0 = vpop.f32.mrf.mxu1 }
 0x2c4   : > { %v1419_v1 = vsel %vm974_vm0, %v1293_v0, -inf }
 0x2e5   : > { %v1353_v7 = vpop.f32.mrf.mxu0 }
 0x2e6   : > { %v1428_v62 = vsel %vm974_vm0, %v1353_v7, -inf }
 0x2e8   : > { %v3026_v52 = vpop.f32.mrf.mxu2 }
 0x2ed   : > { %v1373_v16 = vpop.f32.mrf.mxu1 }
 0x2ee   : > { %v1431_v3 = vsel %vm974_vm0, %v1373_v16, -inf }
 0x2f0   : > { %v3028_v54 = vpop.f32.mrf.mxu3 }
 0x2f8   : > { %v3030_v55 = vpop.f32.mrf.mxu2 }
 0x300   : > { %v3032_v57 = vpop.f32.mrf.mxu3 }
 0x308   : > { %v3034_v58 = vpop.f32.mrf.mxu2 }
 0x310   : > { %v3036_v60 = vpop.f32.mrf.mxu3 }
 0x318   : > { %v3038_v21 = vpop.f32.mrf.mxu2 }
 0x320   : > { %v3040_v23 = vpop.f32.mrf.mxu3  ;;  %v1313_v61 = vpop.f32.mrf.mxu2 }
 0x321   : > { %v1422_v63 = vsel %vm974_vm0, %v1313_v61, -inf }
 0x322   : > { %1423 = vmax.xlane.f32.xlu1 %v1422_v63 }
 0x328   : > { %v1333_v59 = vpop.f32.mrf.mxu3  ;;  %v1393_v8 = vpop.f32.mrf.mxu2 }
 0x329   : > { %v1425_v2 = vsel %vm974_vm0, %v1333_v59, -inf  ;;  %v1434_v12 = vsel %vm974_vm0, %v1393_v8, -inf }
 0x32a   : > { %1420 = vmax.xlane.f32.xlu1 %v1419_v1  ;;  %1426 = vmax.xlane.f32.xlu2 %v1425_v2 }
 0x330   : > { %v1413_v11 = vpop.f32.mrf.mxu3 }
 0x331   : > { %v1437_v14 = vsel %vm974_vm0, %v1413_v11, -inf }
 0x332   : > { %1429 = vmax.xlane.f32.xlu1 %v1428_v62  ;;  %1435 = vmax.xlane.f32.xlu2 %v1434_v12 }
 0x333   : > { %1438 = vmax.xlane.f32.xlu0 %v1437_v14 }
 0x33a   : > { %1432 = vmax.xlane.f32.xlu2 %v1431_v3 }
 0x342   : > { %1465 = vadd.xlane.f32.xlu2 %v1464_v22 }
 0x395   : > { %v1424_v56 = vpop.xlane.xlu1 %1423 }
 0x396   : > { %v1442_v24 = vsub.f32 %v1313_v61, %v1424_v56 }
 0x398   : > { %v1452_v25 = vmul.f32 1.442695, %v1442_v24 }
 0x39a   : > { %2461 = vpow2.f32 %v1452_v25 }
 0x39d   : > { %v1421_v27 = vpop.xlane.xlu1 %1420  ;;  %v1427_v13 = vpop.xlane.xlu2 %1426 }
 0x39e   : > { %v1441_v28 = vsub.f32 %v1293_v0, %v1421_v27  ;;  %v1443_v10 = vsub.f32 %v1333_v59, %v1427_v13 }
 0x3a0   : > { %v2462_v29 = vpop.eup %2461  ;;  %v1450_v31 = vmul.f32 1.442695, %v1441_v28  ;;  %v1454_v18 = vmul.f32 1.442695, %v1443_v10  ;;  %v1699_v28 = vstv %s2285_s27  ;;  %v1689_v10 = vstv %s1688_s8  ;;  %s1956_s27 = scalar_lea.hbm %s3177_s6, %s2291_s14  ;;  %s1958_s8 = sshll.u32 %s316_s25, 4  ;;  %s1959_s8 = int_to_ptr.vmem [resolvable:$true] %s1958_s8 }
 0x3a1   : > { %v1470_v33 = vsel %vm974_vm0, %v2462_v29, 0.0 }
 0x3a2   : > { %2463 = vpow2.f32 %v1450_v31  ;;  %1471 = vadd.xlane.f32.xlu0 %v1470_v33  ;;  %v1691_v31 = vmul.f32 %v1689_v10, %v3028_v54 }
 0x3a3   : > { %2465 = vpow2.f32 %v1454_v18 }
 0x3a5   : > { %v1430_v34 = vpop.xlane.xlu1 %1429  ;;  %v1436_v36 = vpop.xlane.xlu2 %1435 }
 0x3a6   : > { %v1444_v6 = vsub.f32 %v1353_v7, %v1430_v34  ;;  %v1446_v30 = vsub.f32 %v1393_v8, %v1436_v36  ;;  %v1439_v38 = vpop.xlane.xlu0 %1438  ;;  %v1692_v36 = vmul.f32 %v1689_v10, %v3030_v55  ;;  %v2495_v55 = vld [vmem:[%s2842_s9 + $0x8] sm:$0xff] }
 0x3a7   : > { %v1447_v20 = vsub.f32 %v1413_v11, %v1439_v38  ;;  %v3069_v38 = vstv %s2286_s18  ;;  %s1960_s18 = sshll.u32 %s1956_s27, 4  ;;  %s1961_s18 = int_to_ptr.hbm [resolvable:$true] %s1960_s18 }
 0x3a8   : > { %v2464_v39 = vpop.eup %2463  ;;  %v1456_v26 = vmul.f32 1.442695, %v1444_v6  ;;  %v1460_v37 = vmul.f32 1.442695, %v1446_v30  ;;  %v1690_v30 = vmul.f32 %v1689_v10, %v3026_v52 }
 0x3a9   : > { %v2466_v50 = vpop.eup %2465  ;;  %v1462_v32 = vmul.f32 1.442695, %v1447_v20  ;;  %v1467_v53 = vsel %vm974_vm0, %v2464_v39, 0.0 }
 0x3aa   : > { %2467 = vpow2.f32 %v1456_v26  ;;  %v1473_v41 = vsel %vm974_vm0, %v2466_v50, 0.0  ;;  %1468 = vadd.xlane.f32.xlu0 %v1467_v53 }
 0x3ab   : > { %2469 = vpow2.f32 %v1460_v37  ;;  %1474 = vadd.xlane.f32.xlu1 %v1473_v41  ;;  %v3072_v37 = vstv %s2287_s20  ;;  %s1946_s20 = scalar_lea.sflag [#allocation4], %s2838_s13 }
 0x3ac   : > { %2471 = vpow2.f32 %v1462_v32  ;;  %v1693_v32 = vmul.f32 %v1689_v10, %v3032_v57 }
 0x3ad   : > { %v1433_v42 = vpop.xlane.xlu2 %1432 }
 0x3ae   : > { %v1445_v43 = vsub.f32 %v1373_v16, %v1433_v42 }
 0x3b0   : > { %v2468_v40 = vpop.eup %2467  ;;  %v1458_v44 = vmul.f32 1.442695, %v1445_v43  ;;  %v1694_v43 = vmul.f32 %v1689_v10, %v3034_v58 }
 0x3b1   : > { %v2470_v4 = vpop.eup %2469  ;;  %v1476_v45 = vsel %vm974_vm0, %v2468_v40, 0.0 }
 0x3b2   : > { %v2472_v46 = vpop.eup %2471  ;;  %2473 = vpow2.f32 %v1458_v44  ;;  %v1482_v35 = vsel %vm974_vm0, %v2470_v4, 0.0  ;;  %1477 = vadd.xlane.f32.xlu0 %v1476_v45 }
 0x3b3   : > { %1483 = vadd.xlane.f32.xlu1 %v1482_v35  ;;  %v1485_v47 = vsel %vm974_vm0, %v2472_v46, 0.0 }
 0x3b4   : > { %1486 = vadd.xlane.f32.xlu2 %v1485_v47  ;;  %v2496_v47 = vld [vmem:[%s2842_s9 + $0x18] sm:$0xff] }
 0x3b5   : > { %v1466_v19 = vpop.xlane.xlu2 %1465 }
 0x3b6   : > { %2475 = vrcp.f32 %v1466_v19 }
 0x3b8   : > { %v2474_v48 = vpop.eup %2473 }
 0x3b9   : > { %v1479_v49 = vsel %vm974_vm0, %v2474_v48, 0.0 }
 0x3bb   : > { %1480 = vadd.xlane.f32.xlu1 %v1479_v49  ;;  %v2497_v49 = vld [vmem:[%s2842_s9 + $0x10] sm:$0xff] }
 0x3bc   : > { %v2476_v51 = vpop.eup %2475 }
 0x3bd   : > { %v1496_v61 = vmul.f32 %v2476_v51, %v2460_v17 }
 0x3bf   : > { %2277 = vmatmul.msk.f32.vlgmr.msra.gmra.mxu0 %vm1063_vm1, %v1496_v61 }
 0x415   : > { %v1472_v63 = vpop.xlane.xlu0 %1471 }
 0x416   : > { %2477 = vrcp.f32 %v1472_v63  ;;  %v2498_v63 = vld [vmem:[%s2842_s9] sm:$0xff] }
 0x41c   : > { %v2478_v0 = vpop.eup %2477 }
 0x41d   : > { %v1498_v59 = vmul.f32 %v2478_v0, %v2462_v29  ;;  %v1469_v1 = vpop.xlane.xlu0 %1468 }
 0x41e   : > { %v1475_v2 = vpop.xlane.xlu1 %1474  ;;  %2479 = vrcp.f32 %v1469_v1  ;;  %v1755_v1 = vstv %s2289_s29 }
 0x41f   : > { %2481 = vrcp.f32 %v1475_v2  ;;  %2279 = vmatmul.msk.f32.vlgmr.msrb.gmra.mxu2 %vm1063_vm1, %v1498_v59 }
 0x424   : > { %v2480_v5 = vpop.eup %2479 }
 0x425   : > { %v2482_v7 = vpop.eup %2481  ;;  %v1497_v8 = vmul.f32 %v2480_v5, %v2464_v39  ;;  %v1478_v9 = vpop.xlane.xlu0 %1477  ;;  %v2499_v5 = vld [vmem:[%s2842_s9 + $0x20] sm:$0xff] }
 0x426   : > { %v1499_v11 = vmul.f32 %v2482_v7, %v2466_v50  ;;  %v1484_v62 = vpop.xlane.xlu1 %1483  ;;  %2483 = vrcp.f32 %v1478_v9  ;;  %v1737_v50 = vstv %s2288_s26  ;;  %v1696_v9 = vmul.f32 %v1689_v10, %v3038_v21  ;;  %s2622_s26 = sshra.s32 %s1961_s18, 4  ;;  %s2623_s26 = int_to_ptr.hbm [resolvable:$true] %s2622_s26 }
 0x427   : > { %2485 = vrcp.f32 %v1484_v62  ;;  %v1487_v12 = vpop.xlane.xlu2 %1486  ;;  %2278 = vmatmul.msk.f32.vlgmr.msra.gmra.mxu1 %vm1063_vm1, %v1497_v8  ;;  %v1739_v41 = vmul.f32 %v2495_v55, %v1737_v50  ;;  %v1741_v19 = vmul.f32 %v2496_v47, %v1737_v50  ;;  %v1740_v51 = vmul.f32 %v2497_v49, %v1737_v50  ;;  %s2624_s29 = scalar_lea.hbm %s2623_s26, 8  ;;  %p2629_p11 = scmp.lt.s32.totalorder %s2623_s26, %s3177_s6 }
 0x428   : > { %2487 = vrcp.f32 %v1487_v12  ;;  %2280 = vmatmul.msk.f32.vlgmr.msrb.gmra.mxu3 %vm1063_vm1, %v1499_v11  ;;  %v1738_v0 = vmul.f32 %v2498_v63, %v1737_v50  ;;  %v1742_v7 = vmul.f32 %v2499_v5, %v1737_v50  ;;  %v2691_v49 = vmov 128.0   ;;  %p2625_p1 = scmp.ne.s32.totalorder %s2623_s26, %s2624_s29  ;;  %p2630_p9 = scmp.lt.s32.totalorder %s2628_s17, %s2624_s29 }
 0x42a   : > { %p2626_p4 = pnand %p2625_p1, %p2810_p7  ;;  %p2631_p2 = por %p2630_p9, %p2629_p11 }
 0x42c   : > { %v2484_v14 = vpop.eup %2483  ;;  %p2627_p8 = pneg %p2626_p4 }
 0x42d   : > { %v2486_v15 = vpop.eup %2485  ;;  %v1500_v16 = vmul.f32 %v2484_v14, %v2468_v40 }
 0x42e   : > { %v2488_v3 = vpop.eup %2487  ;;  %v1502_v17 = vmul.f32 %v2486_v15, %v2470_v4  ;;  %v1481_v22 = vpop.xlane.xlu1 %1480  ;;  %v1697_v15 = vmul.f32 %v1689_v10, %v3040_v23  ;;  %p2632_p10 = pnand %p2631_p2, %p2627_p8 }
 0x42f   : > { %v1503_v56 = vmul.f32 %v2488_v3, %v2472_v46  ;;  %2489 = vrcp.f32 %v1481_v22  ;;  %2281 = vmatmul.msk.f32.vlgmr.msrb.gmra.mxu0 %vm1063_vm1, %v1500_v16  ;;  %v1695_v22 = vmul.f32 %v1689_v10, %v3036_v60 }
 0x430   : > { %2283 = vmatmul.msk.f32.vlgmr.msra.gmra.mxu2 %vm1063_vm1, %v1502_v17  ;;  %2491 = vrcp.f32 %v2691_v49 }
 0x431   : > { %2284 = vmatmul.msk.f32.vlgmr.msra.gmra.mxu3 %vm1063_vm1, %v1503_v56 }
 0x435   : > { %v2490_v24 = vpop.eup %2489 }
 0x436   : > { %v1501_v25 = vmul.f32 %v2490_v24, %v2474_v48 }
 0x438   : > { %2282 = vmatmul.msk.f32.vlgmr.msrb.gmra.mxu1 %vm1063_vm1, %v1501_v25 }
 0x43c   : > { %v1524_v13 = vpop.f32.mrf.mxu0 }
 0x43d   : > { %v1700_v34 = vmul.f32 %v1699_v28, %v1524_v13  ;;  %v2500_v13 = vld [vmem:[%s2842_s9 + $0x30] sm:$0xff] }
 0x43e   : > { %v1744_v21 = vmul.f32 %v2500_v13, %v1737_v50 }
 0x43f   : > { %v1708_v26 = vadd.f32 %v1700_v34, %v1690_v30 }
 0x441   : > { %v1718_v4 = vadd.f32 %v3069_v38, %v1708_v26 }
 0x443   : > { %v1728_v58 = vmul.f32 %v3072_v37, %v1718_v4 }
 0x445   : > { %v1746_v56 = vadd.f32 %v1738_v0, %v1728_v58 }
 0x447   : > { %v1756_v10 = vadd.f32 %v1755_v1, %v1746_v56 }
 0x4a2   : > { %v1570_v27 = vpop.f32.mrf.mxu2 }
 0x4a3   : > { %v1702_v18 = vmul.f32 %v1699_v28, %v1570_v27 }
 0x4a4   : > { %v1547_v29 = vpop.f32.mrf.mxu1 }
 0x4a5   : > { %v1701_v33 = vmul.f32 %v1699_v28, %v1547_v29  ;;  %v1710_v20 = vadd.f32 %v1702_v18, %v1692_v36 }
 0x4a7   : > { %v1709_v6 = vadd.f32 %v1701_v33, %v1691_v31  ;;  %v1720_v40 = vadd.f32 %v3069_v38, %v1710_v20  ;;  %v2502_v20 = vld [vmem:[%s2842_s9 + $0x28] sm:$0xff] }
 0x4a9   : > { %v1719_v39 = vadd.f32 %v3069_v38, %v1709_v6  ;;  %v1730_v48 = vmul.f32 %v3072_v37, %v1720_v40  ;;  %v2501_v6 = vld [vmem:[%s2842_s9 + $0x38] sm:$0xff] }
 0x4aa   : > { %v1745_v60 = vmul.f32 %v2501_v6, %v1737_v50 }
 0x4ab   : > { %v1593_v54 = vpop.f32.mrf.mxu3  ;;  %v1729_v53 = vmul.f32 %v3072_v37, %v1719_v39  ;;  %v1748_v16 = vadd.f32 %v1740_v51, %v1730_v48  ;;  %v1743_v39 = vmul.f32 %v2502_v20, %v1737_v50  ;;  %v2492_v51 = vpop.eup %2491 }
 0x4ac   : > { %v1703_v52 = vmul.f32 %v1699_v28, %v1593_v54  ;;  %v1616_v42 = vpop.f32.mrf.mxu0  ;;  %vm1801_vm9 = vweird.f32 %v2492_v51 }
 0x4ad   : > { %v1704_v44 = vmul.f32 %v1699_v28, %v1616_v42  ;;  %v1747_v35 = vadd.f32 %v1739_v41, %v1729_v53  ;;  %v1758_v34 = vadd.f32 %v1755_v1, %v1748_v16 }
 0x4ae   : > { %v1711_v45 = vadd.f32 %v1703_v52, %v1693_v32 }
 0x4af   : > { %v1712_v46 = vadd.f32 %v1704_v44, %v1694_v43  ;;  %v3091_v11 = vadd.f32 %v1755_v1, %v1747_v35  ;;  %v1775_v52 = vrot.slane %v1758_v34, 6 }
 0x4b0   : > { %v1721_v57 = vadd.f32 %v3069_v38, %v1711_v45 }
 0x4b1   : > { %v1722_v61 = vadd.f32 %v3069_v38, %v1712_v46  ;;  %v1772_v31 = vrot.slane %v3091_v11, 7 }
 0x4b2   : > { %v1731_v59 = vmul.f32 %v3072_v37, %v1721_v57 }
 0x4b3   : > { %v1732_v2 = vmul.f32 %v3072_v37, %v1722_v61  ;;  %v1662_v8 = vpop.f32.mrf.mxu2  ;;  %v1774_v41 = vsel %vm1773_vm2, %v1772_v31, %v1756_v10  ;;  %v1797_v61 = vmul.f32 128.0, %v2492_v51 }
 0x4b4   : > { %v1749_v62 = vadd.f32 %v1741_v19, %v1731_v59  ;;  %v1706_v12 = vmul.f32 %v1699_v28, %v1662_v8  ;;  %v1685_v14 = vpop.f32.mrf.mxu3 }
 0x4b5   : > { %v1707_v3 = vmul.f32 %v1699_v28, %v1685_v14  ;;  %v1639_v17 = vpop.f32.mrf.mxu1  ;;  %v1750_v27 = vadd.f32 %v1742_v7, %v1732_v2  ;;  %v1798_v58 = vsub.f32 1.0, %v1797_v61 }
 0x4b6   : > { %v1714_v24 = vadd.f32 %v1706_v12, %v1696_v9  ;;  %v1705_v25 = vmul.f32 %v1699_v28, %v1639_v17  ;;  %v3097_v18 = vadd.f32 %v1755_v1, %v1749_v62 }
 0x4b7   : > { %v1715_v29 = vadd.f32 %v1707_v3, %v1697_v15  ;;  %v1760_v26 = vadd.f32 %v1755_v1, %v1750_v27  ;;  %v1799_v63 = vmul.f32 %v2492_v51, %v1798_v58 }
 0x4b8   : > { %v1724_v23 = vadd.f32 %v3069_v38, %v1714_v24  ;;  %v1713_v33 = vadd.f32 %v1705_v25, %v1695_v22  ;;  %v1778_v32 = vrot.slane %v3097_v18, 5 }
 0x4b9   : > { %v1725_v36 = vadd.f32 %v3069_v38, %v1715_v29  ;;  %v1781_v44 = vrot.slane %v1760_v26, 4  ;;  %v1800_v0 = vadd.f32 %v2492_v51, %v1799_v63 }
 0x4ba   : > { %v1734_v28 = vmul.f32 %v3072_v37, %v1724_v23  ;;  %v1723_v30 = vadd.f32 %v3069_v38, %v1713_v33  ;;  %v1777_v38 = vsel %vm1776_vm3, %v1775_v52, %v1774_v41 }
 0x4bb   : > { %v1735_v54 = vmul.f32 %v3072_v37, %v1725_v36  ;;  %v1780_v45 = vsel %vm1779_vm4, %v1778_v32, %v1777_v38  ;;  %v1802_v59 = vsel %vm1801_vm9, %v2492_v51, %v1800_v0 }
 0x4bc   : > { %v1752_v53 = vadd.f32 %v1744_v21, %v1734_v28  ;;  %v1733_v55 = vmul.f32 %v3072_v37, %v1723_v30  ;;  %v1783_v37 = vsel %vm1782_vm5, %v1781_v44, %v1780_v45 }
 0x4bd   : > { %v1753_v42 = vadd.f32 %v1745_v60, %v1735_v54 }
 0x4be   : > { %v1751_v43 = vadd.f32 %v1743_v39, %v1733_v55  ;;  %v1762_v40 = vadd.f32 %v1755_v1, %v1752_v53 }
 0x4bf   : > { %v1763_v4 = vadd.f32 %v1755_v1, %v1753_v42 }
 0x4c0   : > { %v1761_v50 = vadd.f32 %v1755_v1, %v1751_v43  ;;  %v1787_v35 = vrot.slane %v1762_v40, 2 }
 0x4c1   : > { %v1790_v47 = vrot.slane %v1763_v4, 1 }
 0x4c2   : > { %v1784_v46 = vrot.slane %v1761_v50, 3 }
 0x4c4   : > { %v1786_v57 = vsel %vm1785_vm6, %v1784_v46, %v1783_v37 }
 0x4c5   : > { %v1789_v19 = vsel %vm1788_vm7, %v1787_v35, %v1786_v57  ;;  %v2425_v57 = vld [vmem:[%s3174_s3] ss:$0 sm:$0xff] }
 0x4c6   : > { %v1792_v48 = vsel %vm1791_vm8, %v1790_v47, %v1789_v19 }
 0x4c7   : > { %1794 = vadd.xlane.f32.xlu2 %v1792_v48 }
 0x53a   : > { %v1795_v1 = vpop.xlane.xlu2 %1794 }
 0x53b   : > { %v1803_v2 = vmul.f32 %v1802_v59, %v1795_v1 }
 0x53d   : > { %v1805_v5 = vrot.slane %v1803_v2, 1  ;;  %v1806_v7 = vrot.slane %v1803_v2, 2  ;;  %v1807_v8 = vrot.slane %v1803_v2, 3  ;;  %v1808_v9 = vrot.slane %v1803_v2, 4 }
 0x53e   : > { %v1809_v62 = vrot.slane %v1803_v2, 5  ;;  %v1810_v12 = vrot.slane %v1803_v2, 6  ;;  %v1811_v14 = vrot.slane %v1803_v2, 7  ;;  %v1820_v15 = vsub.f32 %v1756_v10, %v1803_v2 }
 0x53f   : > { %v1821_v16 = vsub.f32 %v3091_v11, %v1805_v5  ;;  %v1822_v3 = vsub.f32 %v1758_v34, %v1806_v7  ;;  %v1823_v17 = vsub.f32 %v3097_v18, %v1807_v8  ;;  %v1824_v22 = vsub.f32 %v1760_v26, %v1808_v9  ;;  %v2426_v9 = vld [vmem:[%s3175_s4] ss:$0 sm:$0xff] }
 0x540   : > { %v1825_v56 = vsub.f32 %v1761_v50, %v1809_v62  ;;  %v1826_v24 = vsub.f32 %v1762_v40, %v1810_v12  ;;  %v1827_v25 = vsub.f32 %v1763_v4, %v1811_v14  ;;  %v1828_v31 = vmul.f32 %v1820_v15, %v1820_v15 }
 0x541   : > { %v1829_v27 = vmul.f32 %v1821_v16, %v1821_v16  ;;  %v1830_v13 = vmul.f32 %v1822_v3, %v1822_v3  ;;  %v1831_v21 = vmul.f32 %v1823_v17, %v1823_v17  ;;  %v1832_v29 = vmul.f32 %v1824_v22, %v1824_v22 }
 0x542   : > { %v1833_v23 = vmul.f32 %v1825_v56, %v1825_v56  ;;  %v1834_v6 = vmul.f32 %v1826_v24, %v1826_v24  ;;  %v1835_v60 = vmul.f32 %v1827_v25, %v1827_v25 }
 0x543   : > { %v1844_v33 = vrot.slane %v1829_v27, 7  ;;  %v1846_v36 = vrot.slane %v1830_v13, 6  ;;  %v1848_v11 = vrot.slane %v1831_v21, 5  ;;  %v1850_v18 = vrot.slane %v1832_v29, 4 }
 0x544   : > { %v1852_v30 = vrot.slane %v1833_v23, 3  ;;  %v1854_v39 = vrot.slane %v1834_v6, 2  ;;  %v1856_v54 = vrot.slane %v1835_v60, 1 }
 0x545   : > { %v1845_v10 = vsel %vm1773_vm2, %v1844_v33, %v1828_v31 }
 0x546   : > { %v1847_v34 = vsel %vm1776_vm3, %v1846_v36, %v1845_v10 }
 0x547   : > { %v1849_v28 = vsel %vm1779_vm4, %v1848_v11, %v1847_v34 }
 0x548   : > { %v1851_v20 = vsel %vm1782_vm5, %v1850_v18, %v1849_v28 }
 0x549   : > { %v1853_v26 = vsel %vm1785_vm6, %v1852_v30, %v1851_v20 }
 0x54a   : > { %v1855_v32 = vsel %vm1788_vm7, %v1854_v39, %v1853_v26 }
 0x54b   : > { %v1857_v53 = vsel %vm1791_vm8, %v1856_v54, %v1855_v32 }
 0x54c   : > { %1859 = vadd.xlane.f32.xlu0 %v1857_v53 }
 0x5bf   : > { %v1860_v55 = vpop.xlane.xlu0 %1859 }
 0x5c0   : > { %v1861_v41 = vmul.f32 %v1860_v55, %v1802_v59 }
 0x5c2   : > { %v1862_v52 = vadd.f32 1e-05, %v1861_v41 }
 0x5c4   : > { %2493 = vrsqrt.f32 %v1862_v52  ;;  %vm1869_vm11 = vweird.f32 %v1862_v52 }
 0x5ca   : > { %v2494_v42 = vpop.eup %2493 }
 0x5cb   : > { %v1864_v43 = vmul.f32 %v2494_v42, %v1862_v52  ;;  %vm1870_vm10 = vweird.f32 %v2494_v42 }
 0x5cc   : > { %vm1871_vm12 = vmor %vm1869_vm11, %vm1870_vm10 }
 0x5cd   : > { %v1865_v40 = vmul.f32 %v2494_v42, %v1864_v43 }
 0x5cf   : > { %v1866_v38 = vmul.f32 0.5, %v1865_v40 }
 0x5d1   : > { %v1867_v44 = vsub.f32 1.5, %v1866_v38 }
 0x5d3   : > { %v1868_v50 = vmul.f32 %v2494_v42, %v1867_v44 }
 0x5d5   : > { %v1872_v4 = vsel %vm1871_vm12, %v2494_v42, %v1868_v50 }
 0x5d6   : > { %v1874_v45 = vrot.slane %v1872_v4, 1  ;;  %v1875_v46 = vrot.slane %v1872_v4, 2  ;;  %v1889_v37 = vmul.f32 %v1872_v4, %v1820_v15  ;;  %v1876_v35 = vrot.slane %v1872_v4, 3 }
 0x5d7   : > { %v1877_v47 = vrot.slane %v1872_v4, 4  ;;  %v1878_v19 = vrot.slane %v1872_v4, 5  ;;  %v1879_v48 = vrot.slane %v1872_v4, 6  ;;  %v1880_v49 = vrot.slane %v1872_v4, 7 }
 0x5d8   : > { %v1890_v51 = vmul.f32 %v1874_v45, %v1821_v16  ;;  %v1891_v61 = vmul.f32 %v1875_v46, %v1822_v3  ;;  %v1892_v58 = vmul.f32 %v1876_v35, %v1823_v17  ;;  %v1901_v2 = vmul.f32 %v2425_v57, %v1889_v37 }
 0x5d9   : > { %v1893_v63 = vmul.f32 %v1877_v47, %v1824_v22  ;;  %v1894_v0 = vmul.f32 %v1878_v19, %v1825_v56  ;;  %v1895_v59 = vmul.f32 %v1879_v48, %v1826_v24  ;;  %v1896_v1 = vmul.f32 %v1880_v49, %v1827_v25 }
 0x5da   : > { %v1902_v5 = vmul.f32 %v2425_v57, %v1890_v51  ;;  %v1903_v7 = vmul.f32 %v2425_v57, %v1891_v61  ;;  %v1904_v8 = vmul.f32 %v2425_v57, %v1892_v58  ;;  %v1913_v56 = vadd.f32 %v2426_v9, %v1901_v2 }
 0x5db   : > { %v1905_v62 = vmul.f32 %v2425_v57, %v1893_v63  ;;  %v1906_v12 = vmul.f32 %v2425_v57, %v1894_v0  ;;  %v1907_v14 = vmul.f32 %v2425_v57, %v1895_v59  ;;  %v1908_v15 = vmul.f32 %v2425_v57, %v1896_v1 }
 0x5dc   : > { %v1914_v16 = vadd.f32 %v2426_v9, %v1902_v5  ;;  %v1915_v3 = vadd.f32 %v2426_v9, %v1903_v7  ;;  %v1916_v17 = vadd.f32 %v2426_v9, %v1904_v8 }
 0x5dd   : > { %v1917_v22 = vadd.f32 %v2426_v9, %v1905_v62  ;;  %v1918_v24 = vadd.f32 %v2426_v9, %v1906_v12  ;;  %v1919_v13 = vadd.f32 %v2426_v9, %v1907_v14  ;;  %v1920_v21 = vadd.f32 %v2426_v9, %v1908_v15 }
 0x5de   : > { %v1929_v25 = vrot.slane %v1914_v16, 7  ;;  %v1931_v27 = vrot.slane %v1915_v3, 6  ;;  %v1933_v31 = vrot.slane %v1916_v17, 5 }
 0x5df   : > { %v1935_v33 = vrot.slane %v1917_v22, 4  ;;  %v1937_v6 = vrot.slane %v1918_v24, 3  ;;  %v1939_v10 = vrot.slane %v1919_v13, 2  ;;  %v1941_v34 = vrot.slane %v1920_v21, 1 }
 0x5e0   : > { %v1930_v29 = vsel %vm1773_vm2, %v1929_v25, %v1913_v56 }
 0x5e1   : > { %v1932_v23 = vsel %vm1776_vm3, %v1931_v27, %v1930_v29 }
 0x5e2   : > { %v1934_v36 = vsel %vm1779_vm4, %v1933_v31, %v1932_v23 }
 0x5e3   : > { %v1936_v60 = vsel %vm1782_vm5, %v1935_v33, %v1934_v36 }
 0x5e4   : > { %v1938_v11 = vsel %vm1785_vm6, %v1937_v6, %v1936_v60 }
 0x5e5   : > { %v1940_v18 = vsel %vm1788_vm7, %v1939_v10, %v1938_v11 }
 0x5e6   : > { %v1942_v28 = vsel %vm1791_vm8, %v1941_v34, %v1940_v18 }
 0x5e7   : > { %1944 = vst [vmem:[%s316_s25] sm:$0xff] %v1942_v28 }
 0x5e8   : > { %2635 = shalt.err (!%p2632_p10)
}
 0x5e9   : > { %2357 = dma.vmem_to_hbm [thread:$0]  (%p2810_p7), %s1959_s8, 128, %s1961_s18, %s1946_s20  }
 0x5ea PF: > { %s1972_s13 = sand.u32 1, %s2670_s21   ;;  %p3184_p12 = scmp.ge.s32.totalorder %s2682_s24, 2 }
 0x5eb   : > { %s1973_s14 = scalar_lea.sflag [#allocation4], %s1972_s13 }
 0x5ec   : > { %p2374_p13 = pnand %p3184_p12, %p2762_p6 }
 0x5ee   : > { %p2375_p0 = pneg %p2374_p13 }
 0x5f0   : > { %2665 = dma.done.wait (%p2375_p0), %s1973_s14, 128  }
 0x5f1   : > { %2667 = vsyncadd (%p2375_p0), %s1973_s14, 4294967168  ;;  %p21_p3 = scmp.ge.s32.totalorder %s2796_s30, 4   ;;  %s3185_s21 = smov %s2674_s22 }
 0x5f2   : > { %s3186_s22 = smov %s2678_s23  ;;  %s3187_s23 = smov %s2806_s10 }
 0x5f3   : > { %s3188_s24 = smov %s2796_s30  ;;  %23 = sbr.rel (!%p21_p3) target bundleno = 7 (0x7), region = 102 }
 0x5f8   :  { %1979 = vsyncpa [#allocation3], 1 }
 0x5f9   :  { %1981 = vsyncpa [#allocation3 + $0x1], 1 }
 0x5fa   :  { %1982 = vsyncpa [#allocation7], 1 }
 0x5fb   :  { %1983 = vsyncpa [#allocation4], 1 }
 0x5fc   :  { %1985 = vsyncpa [#allocation4 + $0x1], 1 }
 0x5fd   :  { %1986 = vsyncpa [#allocation5], 1 }
 0x5fe   :  { %1988 = vsyncpa [#allocation5 + $0x1], 1 }

</bundles_post_ra>
